<compile_context>
chip_gen: v6e
topology: v6e:2x2x1
jax: 0.10.0
libtpu: 0.0.40
codegen_flags: <defaults>
</compile_context>

<pallas_src>
import math
import functools

import jax
import jax.numpy as jnp
from jax.experimental import pallas as pl
from jax.experimental.pallas import tpu as pltpu

LN_EPS = 1e-5
_GELU_C = math.sqrt(2.0 / math.pi)            # tanh-approx GELU constant


# ----------------------------------------------------------------- hardware-aware tile pickers
@functools.lru_cache(maxsize=None)
def _vmem_capacity_bytes():
    try:
        return int(pltpu.get_tpu_info().vmem_capacity_bytes)
    except Exception:
        return 64 * 1024 * 1024               # conservative fallback = v7x per-TC VMEM


def _vmem_limit_bytes():
    # explicit scoped-VMEM limit (defaults are only 16/32 MiB); leave 1/8 headroom.
    return int(_vmem_capacity_bytes() * 7 // 8)


def _row_tile(n, cap):
    cap = max(8, int(cap) // 8 * 8)
    if n <= cap:
        return n
    t = cap
    while t >= 8:                             # keep sublane (8) divisibility
        if n % t == 0:
            return t
        t -= 8
    # fallback: cdiv grid; garbage edge rows stay row-local and are masked on writeback.
    return cap


def _ln_row_cap(C):
    budget = _vmem_capacity_bytes() // 3
    lane_pad = 1 if C >= 128 else max(1, 128 // max(C, 1))   # lane padding when C < 128
    per_row = 12 * C * lane_pad               # 2 buffers x (4B f32 in + 2B bf16 out)
    return int(min(max((budget // per_row) // 8 * 8, 64), 2048))


def _spatial_col_tile(nh, ws2, ncol):
    budget = _vmem_capacity_bytes() // 3
    per_col = 2 * nh * ws2 * (2 + 2)          # 2 buffers x bf16 (in + out), all heads
    cap = min(max(budget // per_col, 256), 32768)
    if ncol <= cap:
        return ncol
    cap = max(128, (cap // 128) * 128)        # keep lane (128) alignment
    t = cap
    while t >= 128:
        if ncol % t == 0:
            return t
        t -= 128
    return cap


def _mlp_tiles(N, C, Hd):
    budget = int(_vmem_capacity_bytes() * 0.55)
    # Hd tile: double-buffered bf16 fc1+fc2 slices cost 8*C*thd bytes; halving keeps it a
    # divisor of Hd (the contraction axis MUST tile exactly — no garbage accumulation).
    thd = Hd
    while 8 * C * thd > budget // 3 and thd % 256 == 0:
        thd //= 2
    lane_pad = 1 if C >= 128 else max(1, 128 // max(C, 1))
    per_row = 30 * C * lane_pad + 6 * thd     # db'ed IO tiles + scratch + hidden temps
    avail = max(budget - 8 * C * thd, budget // 4)
    tm = _row_tile(N, cap=min(max(avail // per_row, 64), 1024))
    return tm, thd


# ----------------------------------------------------------------------------- kernels
def layernorm_kernel(x_ref, g_ref, b_ref, o_ref):
    x = x_ref[...].astype(jnp.float32)
    mean = jnp.mean(x, axis=-1, keepdims=True)
    var = jnp.mean(jnp.square(x - mean), axis=-1, keepdims=True)
    xhat = (x - mean) * jax.lax.rsqrt(var + LN_EPS)
    o_ref[...] = (xhat * g_ref[...] + b_ref[...]).astype(o_ref.dtype)


def spatial_mlp_kernel(x_ref, w_ref, b_ref, o_ref):
    # x_ref: (nh, ws2, tc) bf16 -- all heads of one lane-dense column tile
    # w_ref: (nh, ws2, ws2) bf16 -- resident grouped-conv weights (all heads)
    # b_ref: (nh, ws2, 1)   f32  -- per-head bias
    nh = x_ref.shape[0]
    for h in range(nh):                       # static unroll; one MXU matmul per head
        acc = jnp.dot(w_ref[h], x_ref[h], preferred_element_type=jnp.float32)
        o_ref[h] = (acc + b_ref[h]).astype(o_ref.dtype)


def mlp_block_kernel(sc_ref, sp_ref, g2_ref, be2_ref,
                     w1_ref, b1_ref, w2_ref, b2_ref, o_ref,
                     z_scr, zn_scr, acc_scr):
    kd = pl.program_id(1)

    @pl.when(kd == 0)
    def _():
        # first residual add + norm2, f32 math; stash z / zn(bf16) in VMEM scratch so the
        # Hd-tiled steps never re-read the activations from HBM.
        z = sc_ref[...].astype(jnp.float32) + sp_ref[...].astype(jnp.float32)
        mean = jnp.mean(z, axis=-1, keepdims=True)
        var = jnp.mean(jnp.square(z - mean), axis=-1, keepdims=True)
        zn = (z - mean) * jax.lax.rsqrt(var + LN_EPS) * g2_ref[...] + be2_ref[...]
        z_scr[...] = z
        zn_scr[...] = zn.astype(jnp.bfloat16)
        acc_scr[...] = jnp.zeros_like(acc_scr)

    # fc1 slice -> GELU (tanh approx: EUP slot, ~free; within test tolerance of exact erf)
    # -> fc2 slice, accumulated in f32 VMEM scratch.  Hidden activation never leaves VMEM.
    h = jnp.dot(zn_scr[...], w1_ref[...],
                preferred_element_type=jnp.float32) + b1_ref[...]
    h = 0.5 * h * (1.0 + jnp.tanh(_GELU_C * (h + 0.044715 * (h * h * h))))
    acc_scr[...] += jnp.dot(h.astype(jnp.bfloat16), w2_ref[...],
                            preferred_element_type=jnp.float32)

    @pl.when(kd == pl.num_programs(1) - 1)
    def _():
        y = acc_scr[...] + b2_ref[...].astype(jnp.float32)
        o_ref[...] = (z_scr[...] + y).astype(o_ref.dtype)


# ----------------------------------------------------------------------------- pallas wrappers
def layernorm_pallas(x2d, gamma, beta, out_dtype=jnp.bfloat16):
    N, C = x2d.shape
    tm = _row_tile(N, cap=_ln_row_cap(C))
    return pl.pallas_call(
        layernorm_kernel,
        out_shape=jax.ShapeDtypeStruct((N, C), out_dtype),
        grid=(pl.cdiv(N, tm),),
        in_specs=[
            pl.BlockSpec((tm, C), lambda i: (i, 0)),
            pl.BlockSpec((1, C), lambda i: (0, 0)),
            pl.BlockSpec((1, C), lambda i: (0, 0)),
        ],
        out_specs=pl.BlockSpec((tm, C), lambda i: (i, 0)),
        compiler_params=pltpu.CompilerParams(
            dimension_semantics=("parallel",),
            vmem_limit_bytes=_vmem_limit_bytes()),
    )(x2d, gamma.reshape(1, C), beta.reshape(1, C))


def spatial_mlp_pallas(xh, w, b):
    # xh: (nh, ws2, ncol = nWB*Ch) bf16 ; w: (nh, ws2, ws2) ; b: (nh, ws2, 1) f32
    nh, ws2, ncol = xh.shape
    tc = _spatial_col_tile(nh, ws2, ncol)
    cost = pl.CostEstimate(
        flops=2 * nh * ws2 * ws2 * ncol,
        transcendentals=0,
        bytes_accessed=2 * 2 * nh * ws2 * ncol + 2 * nh * ws2 * ws2 + 4 * nh * ws2,
    )
    return pl.pallas_call(
        spatial_mlp_kernel,
        out_shape=jax.ShapeDtypeStruct((nh, ws2, ncol), jnp.bfloat16),
        grid=(pl.cdiv(ncol, tc),),
        in_specs=[
            pl.BlockSpec((nh, ws2, tc), lambda j: (0, 0, j)),
            pl.BlockSpec((nh, ws2, ws2), lambda j: (0, 0, 0)),
            pl.BlockSpec((nh, ws2, 1), lambda j: (0, 0, 0)),
        ],
        out_specs=pl.BlockSpec((nh, ws2, tc), lambda j: (0, 0, j)),
        cost_estimate=cost,
        compiler_params=pltpu.CompilerParams(
            dimension_semantics=("parallel",),
            vmem_limit_bytes=_vmem_limit_bytes()),
    )(xh, w.astype(jnp.bfloat16), b)


def mlp_block_pallas(shortcut2d, spatial2d, g2, b2, w1, b1, w2, b2f):
    N, C = shortcut2d.shape
    Hd = w1.shape[1]
    tm, thd = _mlp_tiles(N, C, Hd)
    cost = pl.CostEstimate(
        flops=4 * N * C * Hd + 10 * N * C,        # fc1 + fc2 + LN/residual adds
        transcendentals=N * Hd,                   # tanh over the hidden activation
        bytes_accessed=(4 + 2 + 4) * N * C + 2 * 2 * C * Hd + 4 * (Hd + 3 * C),
    )
    return pl.pallas_call(
        mlp_block_kernel,
        out_shape=jax.ShapeDtypeStruct((N, C), shortcut2d.dtype),
        grid=(pl.cdiv(N, tm), Hd // thd),
        in_specs=[
            pl.BlockSpec((tm, C), lambda i, k: (i, 0)),    # shortcut (resident over k)
            pl.BlockSpec((tm, C), lambda i, k: (i, 0)),    # spatial branch (bf16)
            pl.BlockSpec((1, C), lambda i, k: (0, 0)),     # norm2 gamma
            pl.BlockSpec((1, C), lambda i, k: (0, 0)),     # norm2 beta
            pl.BlockSpec((C, thd), lambda i, k: (0, k)),   # fc1 weight slice (bf16)
            pl.BlockSpec((1, thd), lambda i, k: (0, k)),   # fc1 bias slice
            pl.BlockSpec((thd, C), lambda i, k: (k, 0)),   # fc2 weight slice (bf16)
            pl.BlockSpec((1, C), lambda i, k: (0, 0)),     # fc2 bias
        ],
        out_specs=pl.BlockSpec((tm, C), lambda i, k: (i, 0)),
        scratch_shapes=[
            pltpu.VMEM((tm, C), jnp.float32),     # z  (shortcut + spatial)
            pltpu.VMEM((tm, C), jnp.bfloat16),    # zn (norm2 output, MXU operand)
            pltpu.VMEM((tm, C), jnp.float32),     # fc2 accumulator
        ],
        input_output_aliases={0: 0},              # residual output reuses shortcut buffer
        cost_estimate=cost,
        compiler_params=pltpu.CompilerParams(
            dimension_semantics=("parallel", "arbitrary"),
            vmem_limit_bytes=_vmem_limit_bytes()),
    )(shortcut2d, spatial2d, g2.reshape(1, C), b2.reshape(1, C),
      w1.astype(jnp.bfloat16), b1.reshape(1, Hd),
      w2.astype(jnp.bfloat16), b2f.reshape(1, C))


# ----------------------------------------------------------------------------- block forward
def swin_mlp_block_forward(x, p, *, input_resolution, num_heads, window_size, shift_size):
    H, W = input_resolution
    B, L, C = x.shape
    assert L == H * W, "input feature has wrong size"

    # constructor-time adjustment from SwinMLPBlock.__init__
    if min(input_resolution) <= window_size:
        shift_size = 0
        window_size = min(input_resolution)
    assert 0 <= shift_size < window_size
    ws = window_size
    ws2 = ws * ws
    P_l, P_r, P_t, P_b = ws - shift_size, shift_size, ws - shift_size, shift_size

    shortcut = x.reshape(B * L, C)

    # --- norm1 (Pallas, row-tiled), bf16 output (feeds the bf16 MXU operand of K2).
    xn = layernorm_pallas(x.reshape(B * L, C), p["norm1_w"], p["norm1_b"],
                          out_dtype=jnp.bfloat16).reshape(B, H, W, C)

    # --- shifted-window zero padding (after norm1, exactly like F.pad in the spec)
    if shift_size > 0:
        xn = jnp.pad(xn, ((0, 0), (P_t, P_b), (P_l, P_r), (0, 0)))
    _H, _W = xn.shape[1], xn.shape[2]
    nWh, nWw = _H // ws, _W // ws
    nWB = B * nWh * nWw
    Ch = C // num_heads

    # --- window partition + head-major relayout in a SINGLE bf16 transpose:
    #     (B,_H,_W,C) -> (num_heads, ws*ws, nWB*Ch)  (lane axis = nWB*Ch, lane-dense)
    xh = xn.reshape(B, nWh, ws, nWw, ws, num_heads, Ch)
    xh = xh.transpose(5, 2, 4, 0, 1, 3, 6).reshape(num_heads, ws2, nWB * Ch)

    # --- grouped 1x1-conv "spatial MLP" (Pallas): one MXU matmul per head per column tile
    yh = spatial_mlp_pallas(xh, p["spatial_w"], p["spatial_b"])

    # --- inverse relayout (window reverse, bf16) and un-pad
    y = yh.reshape(num_heads, ws, ws, B, nWh, nWw, Ch)
    y = y.transpose(3, 4, 1, 5, 2, 0, 6).reshape(B, _H, _W, C)
    if shift_size > 0:
        y = y[:, P_t:_H - P_b, P_l:_W - P_r, :]
    y = y.reshape(B * L, C)

    # --- fused (shortcut + spatial) -> norm2 -> Mlp -> residual (Pallas, row + Hd tiled)
    out = mlp_block_pallas(shortcut, y, p["norm2_w"], p["norm2_b"],
                           p["fc1_w"], p["fc1_b"], p["fc2_w"], p["fc2_b"])
    return out.reshape(B, L, C)


def basic_layer_forward(x, blocks_params, *, input_resolution, num_heads, window_size):
    # BasicLayer: even blocks shift=0, odd blocks shift=window_size//2
    for i, bp in enumerate(blocks_params):
        x = swin_mlp_block_forward(
            x, bp, input_resolution=input_resolution, num_heads=num_heads,
            window_size=window_size,
            shift_size=0 if i % 2 == 0 else window_size // 2)
    # TODO(synk): optional downsample (PatchMerging) at the end of BasicLayer is not
    # implemented (reference default is downsample=None); Dropout/DropPath are identity
    # at inference (drop=0.0).
    return x


# ----------------------------------------------------------------------------- pure-JAX reference
def _ln_ref(v, g, b):
    m = jnp.mean(v, -1, keepdims=True)
    va = jnp.mean((v - m) ** 2, -1, keepdims=True)
    return (v - m) * jax.lax.rsqrt(va + LN_EPS) * g + b


def swin_mlp_block_reference(x, p, *, input_resolution, num_heads, window_size, shift_size):
    H, W = input_resolution
    B, L, C = x.shape
    if min(input_resolution) <= window_size:
        shift_size = 0
        window_size = min(input_resolution)
    ws = window_size
    P_l, P_r, P_t, P_b = ws - shift_size, shift_size, ws - shift_size, shift_size

    shortcut = x
    xn = _ln_ref(x, p["norm1_w"], p["norm1_b"]).reshape(B, H, W, C)
    xs = jnp.pad(xn, ((0, 0), (P_t, P_b), (P_l, P_r), (0, 0))) if shift_size > 0 else xn
    _H, _W = xs.shape[1], xs.shape[2]
    xw = xs.reshape(B, _H // ws, ws, _W // ws, ws, C).transpose(0, 1, 3, 2, 4, 5)
    xw = xw.reshape(-1, ws * ws, C)
    nWB = xw.shape[0]
    Ch = C // num_heads
    xh = xw.reshape(nWB, ws * ws, num_heads, Ch).transpose(0, 2, 1, 3)
    yh = jnp.einsum("hpq,nhqc->nhpc", p["spatial_w"], xh) + p["spatial_b"][None]
    yw = yh.transpose(0, 2, 1, 3).reshape(nWB, ws * ws, C)
    y = yw.reshape(B, _H // ws, _W // ws, ws, ws, C).transpose(0, 1, 3, 2, 4, 5)
    y = y.reshape(B, _H, _W, C)
    if shift_size > 0:
        y = y[:, P_t:_H - P_b, P_l:_W - P_r, :]
    y = y.reshape(B, L, C)
    z = shortcut + y
    zn = _ln_ref(z, p["norm2_w"], p["norm2_b"])
    h = zn @ p["fc1_w"] + p["fc1_b"]
    h = 0.5 * h * (1.0 + jax.lax.erf(h / math.sqrt(2.0)))   # exact GELU (nn.GELU)
    return z + (h @ p["fc2_w"] + p["fc2_b"])


def basic_layer_reference(x, blocks_params, *, input_resolution, num_heads, window_size):
    for i, bp in enumerate(blocks_params):
        x = swin_mlp_block_reference(
            x, bp, input_resolution=input_resolution, num_heads=num_heads,
            window_size=window_size,
            shift_size=0 if i % 2 == 0 else window_size // 2)
    return x


# ----------------------------------------------------------------------------- main
if __name__ == "__main__":
    B = 2
    dim = 32
    H = W = 8
    num_heads = 4
    window_size = 4
    depth = 2                      # block 0: shift 0 ; block 1: shift = window_size // 2
    mlp_ratio = 4.0

    hidden = int(dim * mlp_ratio)
    L = H * W
    ws2 = window_size * window_size

    key = jax.random.PRNGKey(0)
    kx, *bkeys = jax.random.split(key, depth + 1)

    def make_block_params(k):
        ks = jax.random.split(k, 10)
        return {
            "norm1_w": 1.0 + 0.1 * jax.random.normal(ks[0], (dim,), jnp.float32),
            "norm1_b": 0.1 * jax.random.normal(ks[1], (dim,), jnp.float32),
            "norm2_w": 1.0 + 0.1 * jax.random.normal(ks[2], (dim,), jnp.float32),
            "norm2_b": 0.1 * jax.random.normal(ks[3], (dim,), jnp.float32),
            # grouped Conv1d(kernel=1, groups=num_heads): per-head (ws2, ws2) weight + bias
            "spatial_w": 0.05 * jax.random.normal(ks[4], (num_heads, ws2, ws2), jnp.float32),
            "spatial_b": 0.05 * jax.random.normal(ks[5], (num_heads, ws2, 1), jnp.float32),
            # Mlp: fc1 (dim->hidden), fc2 (hidden->dim); stored as (in, out) for x @ W
            "fc1_w": 0.05 * jax.random.normal(ks[6], (dim, hidden), jnp.float32),
            "fc1_b": 0.05 * jax.random.normal(ks[7], (hidden,), jnp.float32),
            "fc2_w": 0.05 * jax.random.normal(ks[8], (hidden, dim), jnp.float32),
            "fc2_b": 0.05 * jax.random.normal(ks[9], (dim,), jnp.float32),
        }

    blocks_params = [make_block_params(k) for k in bkeys]
    x = jax.random.normal(kx, (B, L, dim), jnp.float32)

    fwd = functools.partial(basic_layer_forward, input_resolution=(H, W),
                            num_heads=num_heads, window_size=window_size)
    out = jax.jit(fwd)(x, blocks_params)
    out = jax.block_until_ready(out)

    ref = basic_layer_reference(x, blocks_params, input_resolution=(H, W),
                                num_heads=num_heads, window_size=window_size)
    assert out.shape == (B, L, dim)
    # bf16 MXU operands / bf16 spatial output / tanh-GELU -> looser tolerance than pure f32
    # (measured max abs err at these shapes is a few e-3).
    assert jnp.allclose(out, ref, atol=2e-2, rtol=2e-2), (
        f"mismatch vs reference, max abs err = {jnp.max(jnp.abs(out - ref))}")

    print("KERNEL_OK")
</pallas_src>

<mosaic_0001>
module attributes {stable_mosaic.version = 11 : i64} {
  func.func @layernorm_kernel(%arg0: i32, %arg1: memref<128x32xf32, #tpu.memory_space<vmem>>, %arg2: memref<1x32xf32, #tpu.memory_space<vmem>>, %arg3: memref<1x32xf32, #tpu.memory_space<vmem>>, %arg4: memref<128x32xbf16, #tpu.memory_space<vmem>>) attributes {dimension_semantics = [#tpu.dimension_semantics<parallel>], iteration_bounds = array<i64: 1>, scalar_prefetch = 0 : i64, scratch_operands = 0 : i64, tpu.core_type = #tpu.core_type<tc>, window_params = [{transform_indices = @transform_0, window_bounds = array<i64: 128, 32>}, {pipeline_mode = #tpu.pipeline_mode<synchronous>, transform_indices = @transform_1, window_bounds = array<i64: 1, 32>}, {pipeline_mode = #tpu.pipeline_mode<synchronous>, transform_indices = @transform_2, window_bounds = array<i64: 1, 32>}, {transform_indices = @transform_3, window_bounds = array<i64: 128, 32>}]} {
    %c0 = arith.constant 0 : index
    %c0_0 = arith.constant 0 : index
    %0 = vector.load %arg1[%c0, %c0_0] : memref<128x32xf32, #tpu.memory_space<vmem>>, vector<128x32xf32>
    %cst = arith.constant dense<0.000000e+00> : vector<128xf32>
    %1 = vector.multi_reduction <add>, %0, %cst [1] : vector<128x32xf32> to vector<128xf32>
    %2 = vector.shape_cast %1 : vector<128xf32> to vector<128x1xf32>
    %cst_1 = arith.constant 3.200000e+01 : f32
    %3 = vector.broadcast %cst_1 : f32 to vector<128x1xf32>
    %4 = arith.divf %2, %3 : vector<128x1xf32>
    %5 = vector.broadcast %4 : vector<128x1xf32> to vector<128x32xf32>
    %6 = arith.subf %0, %5 : vector<128x32xf32>
    %7 = arith.mulf %6, %6 : vector<128x32xf32>
    %cst_2 = arith.constant dense<0.000000e+00> : vector<128xf32>
    %8 = vector.multi_reduction <add>, %7, %cst_2 [1] : vector<128x32xf32> to vector<128xf32>
    %9 = vector.shape_cast %8 : vector<128xf32> to vector<128x1xf32>
    %cst_3 = arith.constant 3.200000e+01 : f32
    %10 = vector.broadcast %cst_3 : f32 to vector<128x1xf32>
    %11 = arith.divf %9, %10 : vector<128x1xf32>
    %12 = vector.broadcast %4 : vector<128x1xf32> to vector<128x32xf32>
    %13 = arith.subf %0, %12 : vector<128x32xf32>
    %cst_4 = arith.constant 9.99999974E-6 : f32
    %14 = vector.broadcast %cst_4 : f32 to vector<128x1xf32>
    %15 = arith.addf %11, %14 : vector<128x1xf32>
    %16 = math.rsqrt %15 : vector<128x1xf32>
    %17 = vector.broadcast %16 : vector<128x1xf32> to vector<128x32xf32>
    %18 = arith.mulf %13, %17 : vector<128x32xf32>
    %c0_5 = arith.constant 0 : index
    %c0_6 = arith.constant 0 : index
    %19 = vector.load %arg2[%c0_5, %c0_6] : memref<1x32xf32, #tpu.memory_space<vmem>>, vector<1x32xf32>
    %20 = vector.broadcast %19 : vector<1x32xf32> to vector<128x32xf32>
    %21 = arith.mulf %18, %20 : vector<128x32xf32>
    %c0_7 = arith.constant 0 : index
    %c0_8 = arith.constant 0 : index
    %22 = vector.load %arg3[%c0_7, %c0_8] : memref<1x32xf32, #tpu.memory_space<vmem>>, vector<1x32xf32>
    %23 = vector.broadcast %22 : vector<1x32xf32> to vector<128x32xf32>
    %24 = arith.addf %21, %23 : vector<128x32xf32>
    %25 = arith.truncf %24 : vector<128x32xf32> to vector<128x32xbf16>
    %c0_9 = arith.constant 0 : index
    %c0_10 = arith.constant 0 : index
    %26 = vector.load %arg4[%c0_9, %c0_10] : memref<128x32xbf16, #tpu.memory_space<vmem>>, vector<128x32xbf16>
    tpu.vector_store %arg4[%c0_9, %c0_10], %25 {strides = array<i32>} : memref<128x32xbf16, #tpu.memory_space<vmem>>, vector<128x32xbf16>,
    return
  }
  func.func @transform_0(%arg0: i32) -> (i32, i32) {
    %c0_i32 = arith.constant 0 : i32
    %c0_i32_0 = arith.constant 0 : i32
    return %arg0, %c0_i32 : i32, i32
  }
  func.func @transform_1(%arg0: i32) -> (i32, i32) {
    %c0_i32 = arith.constant 0 : i32
    %c0_i32_0 = arith.constant 0 : i32
    %c0_i32_1 = arith.constant 0 : i32
    return %c0_i32, %c0_i32_0 : i32, i32
  }
  func.func @transform_2(%arg0: i32) -> (i32, i32) {
    %c0_i32 = arith.constant 0 : i32
    %c0_i32_0 = arith.constant 0 : i32
    %c0_i32_1 = arith.constant 0 : i32
    return %c0_i32, %c0_i32_0 : i32, i32
  }
  func.func @transform_3(%arg0: i32) -> (i32, i32) {
    %c0_i32 = arith.constant 0 : i32
    %c0_i32_0 = arith.constant 0 : i32
    return %arg0, %c0_i32 : i32, i32
  }
}

module attributes {stable_mosaic.version = 11 : i64} {
  func.func @spatial_mlp_kernel(%arg0: i32, %arg1: memref<4x16x64xbf16, #tpu.memory_space<vmem>>, %arg2: memref<4x16x16xbf16, #tpu.memory_space<vmem>>, %arg3: memref<4x16x1xf32, #tpu.memory_space<vmem>>, %arg4: memref<4x16x64xbf16, #tpu.memory_space<vmem>>) attributes {dimension_semantics = [#tpu.dimension_semantics<parallel>], iteration_bounds = array<i64: 1>, scalar_prefetch = 0 : i64, scratch_operands = 0 : i64, tpu.core_type = #tpu.core_type<tc>, window_params = [{transform_indices = @transform_0, window_bounds = array<i64: 4, 16, 64>}, {pipeline_mode = #tpu.pipeline_mode<synchronous>, transform_indices = @transform_1, window_bounds = array<i64: 4, 16, 16>}, {pipeline_mode = #tpu.pipeline_mode<synchronous>, transform_indices = @transform_2, window_bounds = array<i64: 4, 16, 1>}, {transform_indices = @transform_3, window_bounds = array<i64: 4, 16, 64>}]} {
    %c0 = arith.constant 0 : index
    %c0_0 = arith.constant 0 : index
    %c0_1 = arith.constant 0 : index
    %0 = vector.load %arg2[%c0, %c0_0, %c0_1] : memref<4x16x16xbf16, #tpu.memory_space<vmem>>, vector<1x16x16xbf16>
    %1 = vector.shape_cast %0 : vector<1x16x16xbf16> to vector<16x16xbf16>
    %c0_2 = arith.constant 0 : index
    %c0_3 = arith.constant 0 : index
    %c0_4 = arith.constant 0 : index
    %2 = vector.load %arg1[%c0_2, %c0_3, %c0_4] : memref<4x16x64xbf16, #tpu.memory_space<vmem>>, vector<1x16x64xbf16>
    %3 = vector.shape_cast %2 : vector<1x16x64xbf16> to vector<16x64xbf16>
    %cst = arith.constant dense<0.000000e+00> : vector<16x64xf32>
    %4 = tpu.matmul %1, %3, %cst {dimension_numbers = #tpu.dot_dimension_numbers<[1], [0], [0], [1], [0, 0, 1, 1], [], []>} : vector<16x16xbf16>, vector<16x64xbf16>, vector<16x64xf32> -> vector<16x64xf32>
    %c0_5 = arith.constant 0 : index
    %c0_6 = arith.constant 0 : index
    %c0_7 = arith.constant 0 : index
    %5 = vector.load %arg3[%c0_5, %c0_6, %c0_7] : memref<4x16x1xf32, #tpu.memory_space<vmem>>, vector<1x16x1xf32>
    %6 = vector.shape_cast %5 : vector<1x16x1xf32> to vector<16x1xf32>
    %7 = vector.broadcast %6 : vector<16x1xf32> to vector<16x64xf32>
    %8 = arith.addf %4, %7 : vector<16x64xf32>
    %9 = arith.truncf %8 : vector<16x64xf32> to vector<16x64xbf16>
    %c0_8 = arith.constant 0 : index
    %c0_9 = arith.constant 0 : index
    %c0_10 = arith.constant 0 : index
    %10 = vector.load %arg4[%c0_8, %c0_9, %c0_10] : memref<4x16x64xbf16, #tpu.memory_space<vmem>>, vector<1x16x64xbf16>
    %11 = vector.shape_cast %10 : vector<1x16x64xbf16> to vector<16x64xbf16>
    %12 = vector.shape_cast %9 : vector<16x64xbf16> to vector<1x16x64xbf16>
    tpu.vector_store %arg4[%c0_8, %c0_9, %c0_10], %12 {strides = array<i32>} : memref<4x16x64xbf16, #tpu.memory_space<vmem>>, vector<1x16x64xbf16>,
    %c1 = arith.constant 1 : index
    %c0_11 = arith.constant 0 : index
    %c0_12 = arith.constant 0 : index
    %13 = vector.load %arg2[%c1, %c0_11, %c0_12] : memref<4x16x16xbf16, #tpu.memory_space<vmem>>, vector<1x16x16xbf16>
    %14 = vector.shape_cast %13 : vector<1x16x16xbf16> to vector<16x16xbf16>
    %c1_13 = arith.constant 1 : index
    %c0_14 = arith.constant 0 : index
    %c0_15 = arith.constant 0 : index
    %15 = vector.load %arg1[%c1_13, %c0_14, %c0_15] : memref<4x16x64xbf16, #tpu.memory_space<vmem>>, vector<1x16x64xbf16>
    %16 = vector.shape_cast %15 : vector<1x16x64xbf16> to vector<16x64xbf16>
    %cst_16 = arith.constant dense<0.000000e+00> : vector<16x64xf32>
    %17 = tpu.matmul %14, %16, %cst_16 {dimension_numbers = #tpu.dot_dimension_numbers<[1], [0], [0], [1], [0, 0, 1, 1], [], []>} : vector<16x16xbf16>, vector<16x64xbf16>, vector<16x64xf32> -> vector<16x64xf32>
    %c1_17 = arith.constant 1 : index
    %c0_18 = arith.constant 0 : index
    %c0_19 = arith.constant 0 : index
    %18 = vector.load %arg3[%c1_17, %c0_18, %c0_19] : memref<4x16x1xf32, #tpu.memory_space<vmem>>, vector<1x16x1xf32>
    %19 = vector.shape_cast %18 : vector<1x16x1xf32> to vector<16x1xf32>
    %20 = vector.broadcast %19 : vector<16x1xf32> to vector<16x64xf32>
    %21 = arith.addf %17, %20 : vector<16x64xf32>
    %22 = arith.truncf %21 : vector<16x64xf32> to vector<16x64xbf16>
    %c1_20 = arith.constant 1 : index
    %c0_21 = arith.constant 0 : index
    %c0_22 = arith.constant 0 : index
    %23 = vector.load %arg4[%c1_20, %c0_21, %c0_22] : memref<4x16x64xbf16, #tpu.memory_space<vmem>>, vector<1x16x64xbf16>
    %24 = vector.shape_cast %23 : vector<1x16x64xbf16> to vector<16x64xbf16>
    %25 = vector.shape_cast %22 : vector<16x64xbf16> to vector<1x16x64xbf16>
    tpu.vector_store %arg4[%c1_20, %c0_21, %c0_22], %25 {strides = array<i32>} : memref<4x16x64xbf16, #tpu.memory_space<vmem>>, vector<1x16x64xbf16>,
    %c2 = arith.constant 2 : index
    %c0_23 = arith.constant 0 : index
    %c0_24 = arith.constant 0 : index
    %26 = vector.load %arg2[%c2, %c0_23, %c0_24] : memref<4x16x16xbf16, #tpu.memory_space<vmem>>, vector<1x16x16xbf16>
    %27 = vector.shape_cast %26 : vector<1x16x16xbf16> to vector<16x16xbf16>
    %c2_25 = arith.constant 2 : index
    %c0_26 = arith.constant 0 : index
    %c0_27 = arith.constant 0 : index
    %28 = vector.load %arg1[%c2_25, %c0_26, %c0_27] : memref<4x16x64xbf16, #tpu.memory_space<vmem>>, vector<1x16x64xbf16>
    %29 = vector.shape_cast %28 : vector<1x16x64xbf16> to vector<16x64xbf16>
    %cst_28 = arith.constant dense<0.000000e+00> : vector<16x64xf32>
    %30 = tpu.matmul %27, %29, %cst_28 {dimension_numbers = #tpu.dot_dimension_numbers<[1], [0], [0], [1], [0, 0, 1, 1], [], []>} : vector<16x16xbf16>, vector<16x64xbf16>, vector<16x64xf32> -> vector<16x64xf32>
    %c2_29 = arith.constant 2 : index
    %c0_30 = arith.constant 0 : index
    %c0_31 = arith.constant 0 : index
    %31 = vector.load %arg3[%c2_29, %c0_30, %c0_31] : memref<4x16x1xf32, #tpu.memory_space<vmem>>, vector<1x16x1xf32>
    %32 = vector.shape_cast %31 : vector<1x16x1xf32> to vector<16x1xf32>
    %33 = vector.broadcast %32 : vector<16x1xf32> to vector<16x64xf32>
    %34 = arith.addf %30, %33 : vector<16x64xf32>
    %35 = arith.truncf %34 : vector<16x64xf32> to vector<16x64xbf16>
    %c2_32 = arith.constant 2 : index
    %c0_33 = arith.constant 0 : index
    %c0_34 = arith.constant 0 : index
    %36 = vector.load %arg4[%c2_32, %c0_33, %c0_34] : memref<4x16x64xbf16, #tpu.memory_space<vmem>>, vector<1x16x64xbf16>
    %37 = vector.shape_cast %36 : vector<1x16x64xbf16> to vector<16x64xbf16>
    %38 = vector.shape_cast %35 : vector<16x64xbf16> to vector<1x16x64xbf16>
    tpu.vector_store %arg4[%c2_32, %c0_33, %c0_34], %38 {strides = array<i32>} : memref<4x16x64xbf16, #tpu.memory_space<vmem>>, vector<1x16x64xbf16>,
    %c3 = arith.constant 3 : index
    %c0_35 = arith.constant 0 : index
    %c0_36 = arith.constant 0 : index
    %39 = vector.load %arg2[%c3, %c0_35, %c0_36] : memref<4x16x16xbf16, #tpu.memory_space<vmem>>, vector<1x16x16xbf16>
    %40 = vector.shape_cast %39 : vector<1x16x16xbf16> to vector<16x16xbf16>
    %c3_37 = arith.constant 3 : index
    %c0_38 = arith.constant 0 : index
    %c0_39 = arith.constant 0 : index
    %41 = vector.load %arg1[%c3_37, %c0_38, %c0_39] : memref<4x16x64xbf16, #tpu.memory_space<vmem>>, vector<1x16x64xbf16>
    %42 = vector.shape_cast %41 : vector<1x16x64xbf16> to vector<16x64xbf16>
    %cst_40 = arith.constant dense<0.000000e+00> : vector<16x64xf32>
    %43 = tpu.matmul %40, %42, %cst_40 {dimension_numbers = #tpu.dot_dimension_numbers<[1], [0], [0], [1], [0, 0, 1, 1], [], []>} : vector<16x16xbf16>, vector<16x64xbf16>, vector<16x64xf32> -> vector<16x64xf32>
    %c3_41 = arith.constant 3 : index
    %c0_42 = arith.constant 0 : index
    %c0_43 = arith.constant 0 : index
    %44 = vector.load %arg3[%c3_41, %c0_42, %c0_43] : memref<4x16x1xf32, #tpu.memory_space<vmem>>, vector<1x16x1xf32>
    %45 = vector.shape_cast %44 : vector<1x16x1xf32> to vector<16x1xf32>
    %46 = vector.broadcast %45 : vector<16x1xf32> to vector<16x64xf32>
    %47 = arith.addf %43, %46 : vector<16x64xf32>
    %48 = arith.truncf %47 : vector<16x64xf32> to vector<16x64xbf16>
    %c3_44 = arith.constant 3 : index
    %c0_45 = arith.constant 0 : index
    %c0_46 = arith.constant 0 : index
    %49 = vector.load %arg4[%c3_44, %c0_45, %c0_46] : memref<4x16x64xbf16, #tpu.memory_space<vmem>>, vector<1x16x64xbf16>
    %50 = vector.shape_cast %49 : vector<1x16x64xbf16> to vector<16x64xbf16>
    %51 = vector.shape_cast %48 : vector<16x64xbf16> to vector<1x16x64xbf16>
    tpu.vector_store %arg4[%c3_44, %c0_45, %c0_46], %51 {strides = array<i32>} : memref<4x16x64xbf16, #tpu.memory_space<vmem>>, vector<1x16x64xbf16>,
    return
  }
  func.func @transform_0(%arg0: i32) -> (i32, i32, i32) {
    %c0_i32 = arith.constant 0 : i32
    %c0_i32_0 = arith.constant 0 : i32
    %c0_i32_1 = arith.constant 0 : i32
    return %c0_i32, %c0_i32_0, %arg0 : i32, i32, i32
  }
  func.func @transform_1(%arg0: i32) -> (i32, i32, i32) {
    %c0_i32 = arith.constant 0 : i32
    %c0_i32_0 = arith.constant 0 : i32
    %c0_i32_1 = arith.constant 0 : i32
    %c0_i32_2 = arith.constant 0 : i32
    return %c0_i32, %c0_i32_0, %c0_i32_1 : i32, i32, i32
  }
  func.func @transform_2(%arg0: i32) -> (i32, i32, i32) {
    %c0_i32 = arith.constant 0 : i32
    %c0_i32_0 = arith.constant 0 : i32
    %c0_i32_1 = arith.constant 0 : i32
    %c0_i32_2 = arith.constant 0 : i32
    return %c0_i32, %c0_i32_0, %c0_i32_1 : i32, i32, i32
  }
  func.func @transform_3(%arg0: i32) -> (i32, i32, i32) {
    %c0_i32 = arith.constant 0 : i32
    %c0_i32_0 = arith.constant 0 : i32
    %c0_i32_1 = arith.constant 0 : i32
    return %c0_i32, %c0_i32_0, %arg0 : i32, i32, i32
  }
}

module attributes {stable_mosaic.version = 11 : i64} {
  func.func @mlp_block_kernel(%arg0: i32, %arg1: i32, %arg2: memref<128x32xf32, #tpu.memory_space<vmem>>, %arg3: memref<128x32xbf16, #tpu.memory_space<vmem>>, %arg4: memref<1x32xf32, #tpu.memory_space<vmem>>, %arg5: memref<1x32xf32, #tpu.memory_space<vmem>>, %arg6: memref<32x128xbf16, #tpu.memory_space<vmem>>, %arg7: memref<1x128xf32, #tpu.memory_space<vmem>>, %arg8: memref<128x32xbf16, #tpu.memory_space<vmem>>, %arg9: memref<1x32xf32, #tpu.memory_space<vmem>>, %arg10: memref<128x32xf32, #tpu.memory_space<vmem>>, %arg11: memref<128x32xf32, #tpu.memory_space<vmem>>, %arg12: memref<128x32xbf16, #tpu.memory_space<vmem>>, %arg13: memref<128x32xf32, #tpu.memory_space<vmem>>) attributes {dimension_semantics = [#tpu.dimension_semantics<parallel>, #tpu.dimension_semantics<arbitrary>], iteration_bounds = array<i64: 1, 1>, scalar_prefetch = 0 : i64, scratch_operands = 3 : i64, tpu.core_type = #tpu.core_type<tc>, window_params = [{transform_indices = @transform_0, window_bounds = array<i64: 128, 32>}, {transform_indices = @transform_1, window_bounds = array<i64: 128, 32>}, {pipeline_mode = #tpu.pipeline_mode<synchronous>, transform_indices = @transform_2, window_bounds = array<i64: 1, 32>}, {pipeline_mode = #tpu.pipeline_mode<synchronous>, transform_indices = @transform_3, window_bounds = array<i64: 1, 32>}, {transform_indices = @transform_4, window_bounds = array<i64: 32, 128>}, {transform_indices = @transform_5, window_bounds = array<i64: 1, 128>}, {transform_indices = @transform_6, window_bounds = array<i64: 128, 32>}, {pipeline_mode = #tpu.pipeline_mode<synchronous>, transform_indices = @transform_7, window_bounds = array<i64: 1, 32>}, {transform_indices = @transform_8, window_bounds = array<i64: 128, 32>}]} {
    %c0_i32 = arith.constant 0 : i32
    %0 = arith.cmpi eq, %arg1, %c0_i32 : i32
    %1 = arith.extui %0 : i1 to i32
    %c0_i32_0 = arith.constant 0 : i32
    %2 = arith.cmpi ne, %1, %c0_i32_0 : i32
    scf.if %2 {
      %c0_19 = arith.constant 0 : index
      %c0_20 = arith.constant 0 : index
      %31 = vector.load %arg2[%c0_19, %c0_20] : memref<128x32xf32, #tpu.memory_space<vmem>>, vector<128x32xf32>
      %c0_21 = arith.constant 0 : index
      %c0_22 = arith.constant 0 : index
      %32 = vector.load %arg3[%c0_21, %c0_22] : memref<128x32xbf16, #tpu.memory_space<vmem>>, vector<128x32xbf16>
      %33 = arith.extf %32 : vector<128x32xbf16> to vector<128x32xf32>
      %34 = arith.addf %31, %33 : vector<128x32xf32>
      %cst_23 = arith.constant dense<0.000000e+00> : vector<128xf32>
      %35 = vector.multi_reduction <add>, %34, %cst_23 [1] : vector<128x32xf32> to vector<128xf32>
      %36 = vector.shape_cast %35 : vector<128xf32> to vector<128x1xf32>
      %cst_24 = arith.constant 3.200000e+01 : f32
      %37 = vector.broadcast %cst_24 : f32 to vector<128x1xf32>
      %38 = arith.divf %36, %37 : vector<128x1xf32>
      %39 = vector.broadcast %38 : vector<128x1xf32> to vector<128x32xf32>
      %40 = arith.subf %34, %39 : vector<128x32xf32>
      %41 = arith.mulf %40, %40 : vector<128x32xf32>
      %cst_25 = arith.constant dense<0.000000e+00> : vector<128xf32>
      %42 = vector.multi_reduction <add>, %41, %cst_25 [1] : vector<128x32xf32> to vector<128xf32>
      %43 = vector.shape_cast %42 : vector<128xf32> to vector<128x1xf32>
      %cst_26 = arith.constant 3.200000e+01 : f32
      %44 = vector.broadcast %cst_26 : f32 to vector<128x1xf32>
      %45 = arith.divf %43, %44 : vector<128x1xf32>
      %46 = vector.broadcast %38 : vector<128x1xf32> to vector<128x32xf32>
      %47 = arith.subf %34, %46 : vector<128x32xf32>
      %cst_27 = arith.constant 9.99999974E-6 : f32
      %48 = vector.broadcast %cst_27 : f32 to vector<128x1xf32>
      %49 = arith.addf %45, %48 : vector<128x1xf32>
      %50 = math.rsqrt %49 : vector<128x1xf32>
      %51 = vector.broadcast %50 : vector<128x1xf32> to vector<128x32xf32>
      %52 = arith.mulf %47, %51 : vector<128x32xf32>
      %c0_28 = arith.constant 0 : index
      %c0_29 = arith.constant 0 : index
      %53 = vector.load %arg4[%c0_28, %c0_29] : memref<1x32xf32, #tpu.memory_space<vmem>>, vector<1x32xf32>
      %54 = vector.broadcast %53 : vector<1x32xf32> to vector<128x32xf32>
      %55 = arith.mulf %52, %54 : vector<128x32xf32>
      %c0_30 = arith.constant 0 : index
      %c0_31 = arith.constant 0 : index
      %56 = vector.load %arg5[%c0_30, %c0_31] : memref<1x32xf32, #tpu.memory_space<vmem>>, vector<1x32xf32>
      %57 = vector.broadcast %56 : vector<1x32xf32> to vector<128x32xf32>
      %58 = arith.addf %55, %57 : vector<128x32xf32>
      %c0_32 = arith.constant 0 : index
      %c0_33 = arith.constant 0 : index
      %59 = vector.load %arg11[%c0_32, %c0_33] : memref<128x32xf32, #tpu.memory_space<vmem>>, vector<128x32xf32>
      tpu.vector_store %arg11[%c0_32, %c0_33], %34 {strides = array<i32>} : memref<128x32xf32, #tpu.memory_space<vmem>>, vector<128x32xf32>,
      %60 = arith.truncf %58 : vector<128x32xf32> to vector<128x32xbf16>
      %c0_34 = arith.constant 0 : index
      %c0_35 = arith.constant 0 : index
      %61 = vector.load %arg12[%c0_34, %c0_35] : memref<128x32xbf16, #tpu.memory_space<vmem>>, vector<128x32xbf16>
      tpu.vector_store %arg12[%c0_34, %c0_35], %60 {strides = array<i32>} : memref<128x32xbf16, #tpu.memory_space<vmem>>, vector<128x32xbf16>,
      %cst_36 = arith.constant 0.000000e+00 : f32
      %62 = vector.broadcast %cst_36 : f32 to vector<128x32xf32>
      %c0_37 = arith.constant 0 : index
      %c0_38 = arith.constant 0 : index
      %63 = vector.load %arg13[%c0_37, %c0_38] : memref<128x32xf32, #tpu.memory_space<vmem>>, vector<128x32xf32>
      tpu.vector_store %arg13[%c0_37, %c0_38], %62 {strides = array<i32>} : memref<128x32xf32, #tpu.memory_space<vmem>>, vector<128x32xf32>,
    } else {
    }
    %c0 = arith.constant 0 : index
    %c0_1 = arith.constant 0 : index
    %3 = vector.load %arg12[%c0, %c0_1] : memref<128x32xbf16, #tpu.memory_space<vmem>>, vector<128x32xbf16>
    %c0_2 = arith.constant 0 : index
    %c0_3 = arith.constant 0 : index
    %4 = vector.load %arg6[%c0_2, %c0_3] : memref<32x128xbf16, #tpu.memory_space<vmem>>, vector<32x128xbf16>
    %cst = arith.constant dense<0.000000e+00> : vector<128x128xf32>
    %5 = tpu.matmul %3, %4, %cst {dimension_numbers = #tpu.dot_dimension_numbers<[1], [0], [0], [1], [0, 0, 1, 1], [], []>} : vector<128x32xbf16>, vector<32x128xbf16>, vector<128x128xf32> -> vector<128x128xf32>
    %c0_4 = arith.constant 0 : index
    %c0_5 = arith.constant 0 : index
    %6 = vector.load %arg7[%c0_4, %c0_5] : memref<1x128xf32, #tpu.memory_space<vmem>>, vector<1x128xf32>
    %7 = vector.broadcast %6 : vector<1x128xf32> to vector<128x128xf32>
    %8 = arith.addf %5, %7 : vector<128x128xf32>
    %cst_6 = arith.constant 5.000000e-01 : f32
    %9 = vector.broadcast %cst_6 : f32 to vector<128x128xf32>
    %10 = arith.mulf %9, %8 : vector<128x128xf32>
    %11 = arith.mulf %8, %8 : vector<128x128xf32>
    %12 = arith.mulf %11, %8 : vector<128x128xf32>
    %cst_7 = arith.constant 4.471500e-02 : f32
    %13 = vector.broadcast %cst_7 : f32 to vector<128x128xf32>
    %14 = arith.mulf %13, %12 : vector<128x128xf32>
    %15 = arith.addf %8, %14 : vector<128x128xf32>
    %cst_8 = arith.constant 0.797884583 : f32
    %16 = vector.broadcast %cst_8 : f32 to vector<128x128xf32>
    %17 = arith.mulf %16, %15 : vector<128x128xf32>
    %18 = math.tanh %17 : vector<128x128xf32>
    %cst_9 = arith.constant 1.000000e+00 : f32
    %19 = vector.broadcast %cst_9 : f32 to vector<128x128xf32>
    %20 = arith.addf %19, %18 : vector<128x128xf32>
    %21 = arith.mulf %10, %20 : vector<128x128xf32>
    %c0_10 = arith.constant 0 : index
    %c0_11 = arith.constant 0 : index
    %22 = vector.load %arg13[%c0_10, %c0_11] : memref<128x32xf32, #tpu.memory_space<vmem>>, vector<128x32xf32>
    %23 = arith.truncf %21 : vector<128x128xf32> to vector<128x128xbf16>
    %c0_12 = arith.constant 0 : index
    %c0_13 = arith.constant 0 : index
    %24 = vector.load %arg8[%c0_12, %c0_13] : memref<128x32xbf16, #tpu.memory_space<vmem>>, vector<128x32xbf16>
    %cst_14 = arith.constant dense<0.000000e+00> : vector<128x32xf32>
    %25 = tpu.matmul %23, %24, %cst_14 {dimension_numbers = #tpu.dot_dimension_numbers<[1], [0], [0], [1], [0, 0, 1, 1], [], []>} : vector<128x128xbf16>, vector<128x32xbf16>, vector<128x32xf32> -> vector<128x32xf32>
    %26 = arith.addf %22, %25 : vector<128x32xf32>
    %c0_15 = arith.constant 0 : index
    %c0_16 = arith.constant 0 : index
    %27 = vector.load %arg13[%c0_15, %c0_16] : memref<128x32xf32, #tpu.memory_space<vmem>>, vector<128x32xf32>
    tpu.vector_store %arg13[%c0_15, %c0_16], %26 {strides = array<i32>} : memref<128x32xf32, #tpu.memory_space<vmem>>, vector<128x32xf32>,
    %c0_i32_17 = arith.constant 0 : i32
    %28 = arith.cmpi eq, %arg1, %c0_i32_17 : i32
    %29 = arith.extui %28 : i1 to i32
    %c0_i32_18 = arith.constant 0 : i32
    %30 = arith.cmpi ne, %29, %c0_i32_18 : i32
    scf.if %30 {
      %c0_19 = arith.constant 0 : index
      %c0_20 = arith.constant 0 : index
      %31 = vector.load %arg13[%c0_19, %c0_20] : memref<128x32xf32, #tpu.memory_space<vmem>>, vector<128x32xf32>
      %c0_21 = arith.constant 0 : index
      %c0_22 = arith.constant 0 : index
      %32 = vector.load %arg9[%c0_21, %c0_22] : memref<1x32xf32, #tpu.memory_space<vmem>>, vector<1x32xf32>
      %33 = vector.broadcast %32 : vector<1x32xf32> to vector<128x32xf32>
      %34 = arith.addf %31, %33 : vector<128x32xf32>
      %c0_23 = arith.constant 0 : index
      %c0_24 = arith.constant 0 : index
      %35 = vector.load %arg11[%c0_23, %c0_24] : memref<128x32xf32, #tpu.memory_space<vmem>>, vector<128x32xf32>
      %36 = arith.addf %35, %34 : vector<128x32xf32>
      %c0_25 = arith.constant 0 : index
      %c0_26 = arith.constant 0 : index
      %37 = vector.load %arg10[%c0_25, %c0_26] : memref<128x32xf32, #tpu.memory_space<vmem>>, vector<128x32xf32>
      tpu.vector_store %arg10[%c0_25, %c0_26], %36 {strides = array<i32>} : memref<128x32xf32, #tpu.memory_space<vmem>>, vector<128x32xf32>,
    } else {
    }
    return
  }
  func.func @transform_0(%arg0: i32, %arg1: i32) -> (i32, i32) {
    %c0_i32 = arith.constant 0 : i32
    %c0_i32_0 = arith.constant 0 : i32
    return %arg0, %c0_i32 : i32, i32
  }
  func.func @transform_1(%arg0: i32, %arg1: i32) -> (i32, i32) {
    %c0_i32 = arith.constant 0 : i32
    %c0_i32_0 = arith.constant 0 : i32
    return %arg0, %c0_i32 : i32, i32
  }
  func.func @transform_2(%arg0: i32, %arg1: i32) -> (i32, i32) {
    %c0_i32 = arith.constant 0 : i32
    %c0_i32_0 = arith.constant 0 : i32
    %c0_i32_1 = arith.constant 0 : i32
    return %c0_i32, %c0_i32_0 : i32, i32
  }
  func.func @transform_3(%arg0: i32, %arg1: i32) -> (i32, i32) {
    %c0_i32 = arith.constant 0 : i32
    %c0_i32_0 = arith.constant 0 : i32
    %c0_i32_1 = arith.constant 0 : i32
    return %c0_i32, %c0_i32_0 : i32, i32
  }
  func.func @transform_4(%arg0: i32, %arg1: i32) -> (i32, i32) {
    %c0_i32 = arith.constant 0 : i32
    %c0_i32_0 = arith.constant 0 : i32
    return %c0_i32, %arg1 : i32, i32
  }
  func.func @transform_5(%arg0: i32, %arg1: i32) -> (i32, i32) {
    %c0_i32 = arith.constant 0 : i32
    %c0_i32_0 = arith.constant 0 : i32
    return %c0_i32, %arg1 : i32, i32
  }
  func.func @transform_6(%arg0: i32, %arg1: i32) -> (i32, i32) {
    %c0_i32 = arith.constant 0 : i32
    %c0_i32_0 = arith.constant 0 : i32
    return %arg1, %c0_i32 : i32, i32
  }
  func.func @transform_7(%arg0: i32, %arg1: i32) -> (i32, i32) {
    %c0_i32 = arith.constant 0 : i32
    %c0_i32_0 = arith.constant 0 : i32
    %c0_i32_1 = arith.constant 0 : i32
    return %c0_i32, %c0_i32_0 : i32, i32
  }
  func.func @transform_8(%arg0: i32, %arg1: i32) -> (i32, i32) {
    %c0_i32 = arith.constant 0 : i32
    %c0_i32_0 = arith.constant 0 : i32
    return %arg0, %c0_i32 : i32, i32
  }
}

module attributes {stable_mosaic.version = 11 : i64} {
  func.func @spatial_mlp_kernel(%arg0: i32, %arg1: memref<4x16x144xbf16, #tpu.memory_space<vmem>>, %arg2: memref<4x16x16xbf16, #tpu.memory_space<vmem>>, %arg3: memref<4x16x1xf32, #tpu.memory_space<vmem>>, %arg4: memref<4x16x144xbf16, #tpu.memory_space<vmem>>) attributes {dimension_semantics = [#tpu.dimension_semantics<parallel>], iteration_bounds = array<i64: 1>, scalar_prefetch = 0 : i64, scratch_operands = 0 : i64, tpu.core_type = #tpu.core_type<tc>, window_params = [{transform_indices = @transform_0, window_bounds = array<i64: 4, 16, 144>}, {pipeline_mode = #tpu.pipeline_mode<synchronous>, transform_indices = @transform_1, window_bounds = array<i64: 4, 16, 16>}, {pipeline_mode = #tpu.pipeline_mode<synchronous>, transform_indices = @transform_2, window_bounds = array<i64: 4, 16, 1>}, {transform_indices = @transform_3, window_bounds = array<i64: 4, 16, 144>}]} {
    %c0 = arith.constant 0 : index
    %c0_0 = arith.constant 0 : index
    %c0_1 = arith.constant 0 : index
    %0 = vector.load %arg2[%c0, %c0_0, %c0_1] : memref<4x16x16xbf16, #tpu.memory_space<vmem>>, vector<1x16x16xbf16>
    %1 = vector.shape_cast %0 : vector<1x16x16xbf16> to vector<16x16xbf16>
    %c0_2 = arith.constant 0 : index
    %c0_3 = arith.constant 0 : index
    %c0_4 = arith.constant 0 : index
    %2 = vector.load %arg1[%c0_2, %c0_3, %c0_4] : memref<4x16x144xbf16, #tpu.memory_space<vmem>>, vector<1x16x144xbf16>
    %3 = vector.shape_cast %2 : vector<1x16x144xbf16> to vector<16x144xbf16>
    %cst = arith.constant dense<0.000000e+00> : vector<16x144xf32>
    %4 = tpu.matmul %1, %3, %cst {dimension_numbers = #tpu.dot_dimension_numbers<[1], [0], [0], [1], [0, 0, 1, 1], [], []>} : vector<16x16xbf16>, vector<16x144xbf16>, vector<16x144xf32> -> vector<16x144xf32>
    %c0_5 = arith.constant 0 : index
    %c0_6 = arith.constant 0 : index
    %c0_7 = arith.constant 0 : index
    %5 = vector.load %arg3[%c0_5, %c0_6, %c0_7] : memref<4x16x1xf32, #tpu.memory_space<vmem>>, vector<1x16x1xf32>
    %6 = vector.shape_cast %5 : vector<1x16x1xf32> to vector<16x1xf32>
    %7 = vector.broadcast %6 : vector<16x1xf32> to vector<16x144xf32>
    %8 = arith.addf %4, %7 : vector<16x144xf32>
    %9 = arith.truncf %8 : vector<16x144xf32> to vector<16x144xbf16>
    %c0_8 = arith.constant 0 : index
    %c0_9 = arith.constant 0 : index
    %c0_10 = arith.constant 0 : index
    %10 = vector.load %arg4[%c0_8, %c0_9, %c0_10] : memref<4x16x144xbf16, #tpu.memory_space<vmem>>, vector<1x16x144xbf16>
    %11 = vector.shape_cast %10 : vector<1x16x144xbf16> to vector<16x144xbf16>
    %12 = vector.shape_cast %9 : vector<16x144xbf16> to vector<1x16x144xbf16>
    tpu.vector_store %arg4[%c0_8, %c0_9, %c0_10], %12 {strides = array<i32>} : memref<4x16x144xbf16, #tpu.memory_space<vmem>>, vector<1x16x144xbf16>,
    %c1 = arith.constant 1 : index
    %c0_11 = arith.constant 0 : index
    %c0_12 = arith.constant 0 : index
    %13 = vector.load %arg2[%c1, %c0_11, %c0_12] : memref<4x16x16xbf16, #tpu.memory_space<vmem>>, vector<1x16x16xbf16>
    %14 = vector.shape_cast %13 : vector<1x16x16xbf16> to vector<16x16xbf16>
    %c1_13 = arith.constant 1 : index
    %c0_14 = arith.constant 0 : index
    %c0_15 = arith.constant 0 : index
    %15 = vector.load %arg1[%c1_13, %c0_14, %c0_15] : memref<4x16x144xbf16, #tpu.memory_space<vmem>>, vector<1x16x144xbf16>
    %16 = vector.shape_cast %15 : vector<1x16x144xbf16> to vector<16x144xbf16>
    %cst_16 = arith.constant dense<0.000000e+00> : vector<16x144xf32>
    %17 = tpu.matmul %14, %16, %cst_16 {dimension_numbers = #tpu.dot_dimension_numbers<[1], [0], [0], [1], [0, 0, 1, 1], [], []>} : vector<16x16xbf16>, vector<16x144xbf16>, vector<16x144xf32> -> vector<16x144xf32>
    %c1_17 = arith.constant 1 : index
    %c0_18 = arith.constant 0 : index
    %c0_19 = arith.constant 0 : index
    %18 = vector.load %arg3[%c1_17, %c0_18, %c0_19] : memref<4x16x1xf32, #tpu.memory_space<vmem>>, vector<1x16x1xf32>
    %19 = vector.shape_cast %18 : vector<1x16x1xf32> to vector<16x1xf32>
    %20 = vector.broadcast %19 : vector<16x1xf32> to vector<16x144xf32>
    %21 = arith.addf %17, %20 : vector<16x144xf32>
    %22 = arith.truncf %21 : vector<16x144xf32> to vector<16x144xbf16>
    %c1_20 = arith.constant 1 : index
    %c0_21 = arith.constant 0 : index
    %c0_22 = arith.constant 0 : index
    %23 = vector.load %arg4[%c1_20, %c0_21, %c0_22] : memref<4x16x144xbf16, #tpu.memory_space<vmem>>, vector<1x16x144xbf16>
    %24 = vector.shape_cast %23 : vector<1x16x144xbf16> to vector<16x144xbf16>
    %25 = vector.shape_cast %22 : vector<16x144xbf16> to vector<1x16x144xbf16>
    tpu.vector_store %arg4[%c1_20, %c0_21, %c0_22], %25 {strides = array<i32>} : memref<4x16x144xbf16, #tpu.memory_space<vmem>>, vector<1x16x144xbf16>,
    %c2 = arith.constant 2 : index
    %c0_23 = arith.constant 0 : index
    %c0_24 = arith.constant 0 : index
    %26 = vector.load %arg2[%c2, %c0_23, %c0_24] : memref<4x16x16xbf16, #tpu.memory_space<vmem>>, vector<1x16x16xbf16>
    %27 = vector.shape_cast %26 : vector<1x16x16xbf16> to vector<16x16xbf16>
    %c2_25 = arith.constant 2 : index
    %c0_26 = arith.constant 0 : index
    %c0_27 = arith.constant 0 : index
    %28 = vector.load %arg1[%c2_25, %c0_26, %c0_27] : memref<4x16x144xbf16, #tpu.memory_space<vmem>>, vector<1x16x144xbf16>
    %29 = vector.shape_cast %28 : vector<1x16x144xbf16> to vector<16x144xbf16>
    %cst_28 = arith.constant dense<0.000000e+00> : vector<16x144xf32>
    %30 = tpu.matmul %27, %29, %cst_28 {dimension_numbers = #tpu.dot_dimension_numbers<[1], [0], [0], [1], [0, 0, 1, 1], [], []>} : vector<16x16xbf16>, vector<16x144xbf16>, vector<16x144xf32> -> vector<16x144xf32>
    %c2_29 = arith.constant 2 : index
    %c0_30 = arith.constant 0 : index
    %c0_31 = arith.constant 0 : index
    %31 = vector.load %arg3[%c2_29, %c0_30, %c0_31] : memref<4x16x1xf32, #tpu.memory_space<vmem>>, vector<1x16x1xf32>
    %32 = vector.shape_cast %31 : vector<1x16x1xf32> to vector<16x1xf32>
    %33 = vector.broadcast %32 : vector<16x1xf32> to vector<16x144xf32>
    %34 = arith.addf %30, %33 : vector<16x144xf32>
    %35 = arith.truncf %34 : vector<16x144xf32> to vector<16x144xbf16>
    %c2_32 = arith.constant 2 : index
    %c0_33 = arith.constant 0 : index
    %c0_34 = arith.constant 0 : index
    %36 = vector.load %arg4[%c2_32, %c0_33, %c0_34] : memref<4x16x144xbf16, #tpu.memory_space<vmem>>, vector<1x16x144xbf16>
    %37 = vector.shape_cast %36 : vector<1x16x144xbf16> to vector<16x144xbf16>
    %38 = vector.shape_cast %35 : vector<16x144xbf16> to vector<1x16x144xbf16>
    tpu.vector_store %arg4[%c2_32, %c0_33, %c0_34], %38 {strides = array<i32>} : memref<4x16x144xbf16, #tpu.memory_space<vmem>>, vector<1x16x144xbf16>,
    %c3 = arith.constant 3 : index
    %c0_35 = arith.constant 0 : index
    %c0_36 = arith.constant 0 : index
    %39 = vector.load %arg2[%c3, %c0_35, %c0_36] : memref<4x16x16xbf16, #tpu.memory_space<vmem>>, vector<1x16x16xbf16>
    %40 = vector.shape_cast %39 : vector<1x16x16xbf16> to vector<16x16xbf16>
    %c3_37 = arith.constant 3 : index
    %c0_38 = arith.constant 0 : index
    %c0_39 = arith.constant 0 : index
    %41 = vector.load %arg1[%c3_37, %c0_38, %c0_39] : memref<4x16x144xbf16, #tpu.memory_space<vmem>>, vector<1x16x144xbf16>
    %42 = vector.shape_cast %41 : vector<1x16x144xbf16> to vector<16x144xbf16>
    %cst_40 = arith.constant dense<0.000000e+00> : vector<16x144xf32>
    %43 = tpu.matmul %40, %42, %cst_40 {dimension_numbers = #tpu.dot_dimension_numbers<[1], [0], [0], [1], [0, 0, 1, 1], [], []>} : vector<16x16xbf16>, vector<16x144xbf16>, vector<16x144xf32> -> vector<16x144xf32>
    %c3_41 = arith.constant 3 : index
    %c0_42 = arith.constant 0 : index
    %c0_43 = arith.constant 0 : index
    %44 = vector.load %arg3[%c3_41, %c0_42, %c0_43] : memref<4x16x1xf32, #tpu.memory_space<vmem>>, vector<1x16x1xf32>
    %45 = vector.shape_cast %44 : vector<1x16x1xf32> to vector<16x1xf32>
    %46 = vector.broadcast %45 : vector<16x1xf32> to vector<16x144xf32>
    %47 = arith.addf %43, %46 : vector<16x144xf32>
    %48 = arith.truncf %47 : vector<16x144xf32> to vector<16x144xbf16>
    %c3_44 = arith.constant 3 : index
    %c0_45 = arith.constant 0 : index
    %c0_46 = arith.constant 0 : index
    %49 = vector.load %arg4[%c3_44, %c0_45, %c0_46] : memref<4x16x144xbf16, #tpu.memory_space<vmem>>, vector<1x16x144xbf16>
    %50 = vector.shape_cast %49 : vector<1x16x144xbf16> to vector<16x144xbf16>
    %51 = vector.shape_cast %48 : vector<16x144xbf16> to vector<1x16x144xbf16>
    tpu.vector_store %arg4[%c3_44, %c0_45, %c0_46], %51 {strides = array<i32>} : memref<4x16x144xbf16, #tpu.memory_space<vmem>>, vector<1x16x144xbf16>,
    return
  }
  func.func @transform_0(%arg0: i32) -> (i32, i32, i32) {
    %c0_i32 = arith.constant 0 : i32
    %c0_i32_0 = arith.constant 0 : i32
    %c0_i32_1 = arith.constant 0 : i32
    return %c0_i32, %c0_i32_0, %arg0 : i32, i32, i32
  }
  func.func @transform_1(%arg0: i32) -> (i32, i32, i32) {
    %c0_i32 = arith.constant 0 : i32
    %c0_i32_0 = arith.constant 0 : i32
    %c0_i32_1 = arith.constant 0 : i32
    %c0_i32_2 = arith.constant 0 : i32
    return %c0_i32, %c0_i32_0, %c0_i32_1 : i32, i32, i32
  }
  func.func @transform_2(%arg0: i32) -> (i32, i32, i32) {
    %c0_i32 = arith.constant 0 : i32
    %c0_i32_0 = arith.constant 0 : i32
    %c0_i32_1 = arith.constant 0 : i32
    %c0_i32_2 = arith.constant 0 : i32
    return %c0_i32, %c0_i32_0, %c0_i32_1 : i32, i32, i32
  }
  func.func @transform_3(%arg0: i32) -> (i32, i32, i32) {
    %c0_i32 = arith.constant 0 : i32
    %c0_i32_0 = arith.constant 0 : i32
    %c0_i32_1 = arith.constant 0 : i32
    return %c0_i32, %c0_i32_0, %arg0 : i32, i32, i32
  }
}

</mosaic_0001>

<bundles_post_ra>
// kernel: basic_layer_forward.6
= control target key start
LH: loop header
LB: loop body
LE: loop exit
PB: predicated region body
PF: predicated region fallthrough
CT: control target
= control target key end

     0   :  { %vm30_vm0 = vcmask 261120   ;;  %vm350_vm1 = vcmask 257024   ;;  %s763_s0 = inlined_call_operand.vmem [shape: f32[128,32], index: 0, kind: input, shape index: {}]   ;;  %s764_s1 = inlined_call_operand.vmem [shape: f32[1,32], index: 1, kind: input, shape index: {}]   ;;  %s765_s2 = inlined_call_operand.vmem [shape: f32[1,32], index: 2, kind: input, shape index: {}]   ;;  %s766_s3 = inlined_call_operand.vmem [shape: bf16[128,32], index: 3, kind: output, shape index: {}]  }
   0x1   :  { %v14_v0 = vld [vmem:[%s763_s0] sm:$0xff]  ;;  %v16_v1 = vld [vmem:[%s763_s0 + $0x10] sm:$0xff]  ;;  %v15_v2 = vld [vmem:[%s763_s0 + $0x8] sm:$0xff] }
   0x2   :  { %v31_v3 = vsel %vm30_vm0, %v14_v0, 0.0  ;;  %v37_v4 = vsel %vm30_vm0, %v16_v1, 0.0  ;;  %v17_v5 = vld [vmem:[%s763_s0 + $0x18] sm:$0xff]  ;;  %v34_v6 = vsel %vm30_vm0, %v15_v2, 0.0  ;;  %v18_v8 = vld [vmem:[%s763_s0 + $0x20] sm:$0xff]  ;;  %v19_v9 = vld [vmem:[%s763_s0 + $0x28] sm:$0xff] }
   0x3   :  { %32 = vadd.xlane.f32.xlu0 %v31_v3  ;;  %38 = vadd.xlane.f32.xlu1 %v37_v4  ;;  %v40_v7 = vsel %vm30_vm0, %v17_v5, 0.0  ;;  %v43_v10 = vsel %vm30_vm0, %v18_v8, 0.0  ;;  %v46_v11 = vsel %vm30_vm0, %v19_v9, 0.0  ;;  %v484_v12 = vld [vmem:[%s763_s0 + $0x30] sm:$0xff]  ;;  %v489_v13 = vld [vmem:[%s763_s0 + $0x38] sm:$0xff]  ;;  %v498_v16 = vld [vmem:[%s763_s0 + $0x40] sm:$0xff] }
   0x4   :  { %v49_v14 = vsel %vm30_vm0, %v484_v12, 0.0  ;;  %v52_v15 = vsel %vm30_vm0, %v489_v13, 0.0  ;;  %v503_v17 = vld [vmem:[%s763_s0 + $0x48] sm:$0xff]  ;;  %v55_v18 = vsel %vm30_vm0, %v498_v16, 0.0  ;;  %v512_v20 = vld [vmem:[%s763_s0 + $0x50] sm:$0xff]  ;;  %v517_v21 = vld [vmem:[%s763_s0 + $0x58] sm:$0xff] }
   0x5   :  { %v58_v19 = vsel %vm30_vm0, %v503_v17, 0.0  ;;  %v61_v22 = vsel %vm30_vm0, %v512_v20, 0.0  ;;  %v64_v23 = vsel %vm30_vm0, %v517_v21, 0.0  ;;  %v526_v24 = vld [vmem:[%s763_s0 + $0x60] sm:$0xff]  ;;  %v531_v25 = vld [vmem:[%s763_s0 + $0x68] sm:$0xff]  ;;  %v540_v28 = vld [vmem:[%s763_s0 + $0x70] sm:$0xff] }
   0x6   :  { %v67_v26 = vsel %vm30_vm0, %v526_v24, 0.0  ;;  %v70_v27 = vsel %vm30_vm0, %v531_v25, 0.0  ;;  %v545_v29 = vld [vmem:[%s763_s0 + $0x78] sm:$0xff]  ;;  %v73_v30 = vsel %vm30_vm0, %v540_v28, 0.0 }
   0x7   :  { %35 = vadd.xlane.f32.xlu0 %v34_v6  ;;  %41 = vadd.xlane.f32.xlu1 %v40_v7  ;;  %v76_v31 = vsel %vm30_vm0, %v545_v29, 0.0 }
   0xb   :  { %44 = vadd.xlane.f32.xlu0 %v43_v10  ;;  %47 = vadd.xlane.f32.xlu1 %v46_v11 }
   0xf   :  { %50 = vadd.xlane.f32.xlu0 %v49_v14  ;;  %53 = vadd.xlane.f32.xlu1 %v52_v15 }
  0x13   :  { %56 = vadd.xlane.f32.xlu0 %v55_v18  ;;  %59 = vadd.xlane.f32.xlu1 %v58_v19 }
  0x17   :  { %62 = vadd.xlane.f32.xlu0 %v61_v22  ;;  %65 = vadd.xlane.f32.xlu1 %v64_v23 }
  0x1b   :  { %68 = vadd.xlane.f32.xlu0 %v67_v26  ;;  %71 = vadd.xlane.f32.xlu1 %v70_v27 }
  0x1f   :  { %74 = vadd.xlane.f32.xlu0 %v73_v30  ;;  %77 = vadd.xlane.f32.xlu1 %v76_v31 }
  0x8c   :  { %v33_v32 = vpop.xlane.xlu0 %32  ;;  %v39_v33 = vpop.xlane.xlu1 %38 }
  0x8d   :  { %v80_v34 = vmul.f32 0.03125, %v33_v32  ;;  %v82_v35 = vmul.f32 0.03125, %v39_v33 }
  0x8f   :  { %v551_v36 = vsub.f32 %v14_v0, %v80_v34  ;;  %v553_v37 = vsub.f32 %v16_v1, %v82_v35 }
  0x90   :  { %v36_v38 = vpop.xlane.xlu0 %35  ;;  %v42_v39 = vpop.xlane.xlu1 %41 }
  0x91   :  { %v81_v40 = vmul.f32 0.03125, %v36_v38  ;;  %v83_v41 = vmul.f32 0.03125, %v42_v39  ;;  %v112_v42 = vmul.f32 %v551_v36, %v551_v36  ;;  %v114_v43 = vmul.f32 %v553_v37, %v553_v37 }
  0x93   :  { %v559_v44 = vsub.f32 %v15_v2, %v81_v40  ;;  %v561_v45 = vsub.f32 %v17_v5, %v83_v41  ;;  %v128_v46 = vsel %vm30_vm0, %v112_v42, 0.0  ;;  %v134_v49 = vsel %vm30_vm0, %v114_v43, 0.0 }
  0x94   :  { %129 = vadd.xlane.f32.xlu0 %v128_v46  ;;  %v45_v47 = vpop.xlane.xlu0 %44  ;;  %v48_v48 = vpop.xlane.xlu1 %47 }
  0x95   :  { %v84_v50 = vmul.f32 0.03125, %v45_v47  ;;  %v85_v51 = vmul.f32 0.03125, %v48_v48  ;;  %v113_v52 = vmul.f32 %v559_v44, %v559_v44  ;;  %v115_v53 = vmul.f32 %v561_v45, %v561_v45 }
  0x97   :  { %v569_v54 = vsub.f32 %v18_v8, %v84_v50  ;;  %v571_v55 = vsub.f32 %v19_v9, %v85_v51  ;;  %v131_v56 = vsel %vm30_vm0, %v113_v52, 0.0  ;;  %v137_v59 = vsel %vm30_vm0, %v115_v53, 0.0 }
  0x98   :  { %135 = vadd.xlane.f32.xlu0 %v134_v49  ;;  %132 = vadd.xlane.f32.xlu1 %v131_v56  ;;  %v51_v57 = vpop.xlane.xlu0 %50  ;;  %v54_v58 = vpop.xlane.xlu1 %53 }
  0x99   :  { %v86_v60 = vmul.f32 0.03125, %v51_v57  ;;  %v87_v61 = vmul.f32 0.03125, %v54_v58  ;;  %v116_v62 = vmul.f32 %v569_v54, %v569_v54  ;;  %v117_v63 = vmul.f32 %v571_v55, %v571_v55 }
  0x9b   :  { %v580_v0 = vsub.f32 %v484_v12, %v86_v60  ;;  %v583_v1 = vsub.f32 %v489_v13, %v87_v61  ;;  %v140_v2 = vsel %vm30_vm0, %v116_v62, 0.0  ;;  %v143_v5 = vsel %vm30_vm0, %v117_v63, 0.0 }
  0x9c   :  { %138 = vadd.xlane.f32.xlu1 %v137_v59  ;;  %141 = vadd.xlane.f32.xlu0 %v140_v2  ;;  %v57_v3 = vpop.xlane.xlu0 %56  ;;  %v60_v4 = vpop.xlane.xlu1 %59 }
  0x9d   :  { %v88_v6 = vmul.f32 0.03125, %v57_v3  ;;  %v89_v7 = vmul.f32 0.03125, %v60_v4  ;;  %v118_v8 = vmul.f32 %v580_v0, %v580_v0  ;;  %v119_v9 = vmul.f32 %v583_v1, %v583_v1 }
  0x9f   :  { %v592_v10 = vsub.f32 %v498_v16, %v88_v6  ;;  %v595_v11 = vsub.f32 %v503_v17, %v89_v7  ;;  %v146_v12 = vsel %vm30_vm0, %v118_v8, 0.0  ;;  %v149_v15 = vsel %vm30_vm0, %v119_v9, 0.0 }
  0xa0   :  { %144 = vadd.xlane.f32.xlu1 %v143_v5  ;;  %147 = vadd.xlane.f32.xlu0 %v146_v12  ;;  %v63_v13 = vpop.xlane.xlu0 %62  ;;  %v66_v14 = vpop.xlane.xlu1 %65 }
  0xa1   :  { %v90_v18 = vmul.f32 0.03125, %v63_v13  ;;  %v91_v19 = vmul.f32 0.03125, %v66_v14  ;;  %v120_v22 = vmul.f32 %v592_v10, %v592_v10  ;;  %v121_v16 = vmul.f32 %v595_v11, %v595_v11 }
  0xa3   :  { %v604_v23 = vsub.f32 %v512_v20, %v90_v18  ;;  %v607_v17 = vsub.f32 %v517_v21, %v91_v19  ;;  %v152_v26 = vsel %vm30_vm0, %v120_v22, 0.0  ;;  %v155_v31 = vsel %vm30_vm0, %v121_v16, 0.0 }
  0xa4   :  { %150 = vadd.xlane.f32.xlu1 %v149_v15  ;;  %153 = vadd.xlane.f32.xlu0 %v152_v26  ;;  %v69_v27 = vpop.xlane.xlu0 %68  ;;  %v72_v30 = vpop.xlane.xlu1 %71  ;;  %v644_v26 = vld [vmem:[%s764_s1] ss:$0 sm:$0xff] }
  0xa5   :  { %v92_v32 = vmul.f32 0.03125, %v69_v27  ;;  %v93_v33 = vmul.f32 0.03125, %v72_v30  ;;  %v122_v34 = vmul.f32 %v604_v23, %v604_v23  ;;  %v123_v20 = vmul.f32 %v607_v17, %v607_v17 }
  0xa7   :  { %v616_v35 = vsub.f32 %v526_v24, %v92_v32  ;;  %v619_v21 = vsub.f32 %v531_v25, %v93_v33  ;;  %v158_v38 = vsel %vm30_vm0, %v122_v34, 0.0  ;;  %v161_v41 = vsel %vm30_vm0, %v123_v20, 0.0  ;;  %v650_v32 = vld [vmem:[%s765_s2] ss:$0 sm:$0xff] }
  0xa8   :  { %156 = vadd.xlane.f32.xlu1 %v155_v31  ;;  %159 = vadd.xlane.f32.xlu0 %v158_v38  ;;  %v75_v39 = vpop.xlane.xlu0 %74  ;;  %v78_v40 = vpop.xlane.xlu1 %77 }
  0xa9   :  { %v94_v42 = vmul.f32 0.03125, %v75_v39  ;;  %v95_v43 = vmul.f32 0.03125, %v78_v40  ;;  %v124_v46 = vmul.f32 %v616_v35, %v616_v35  ;;  %v125_v24 = vmul.f32 %v619_v21, %v619_v21 }
  0xab   :  { %v628_v47 = vsub.f32 %v540_v28, %v94_v42  ;;  %v631_v25 = vsub.f32 %v545_v29, %v95_v43  ;;  %v164_v48 = vsel %vm30_vm0, %v124_v46, 0.0  ;;  %v167_v49 = vsel %vm30_vm0, %v125_v24, 0.0 }
  0xac   :  { %162 = vadd.xlane.f32.xlu1 %v161_v41  ;;  %165 = vadd.xlane.f32.xlu0 %v164_v48 }
  0xad   :  { %v126_v50 = vmul.f32 %v628_v47, %v628_v47  ;;  %v127_v51 = vmul.f32 %v631_v25, %v631_v25 }
  0xaf   :  { %v170_v52 = vsel %vm30_vm0, %v126_v50, 0.0  ;;  %v173_v28 = vsel %vm30_vm0, %v127_v51, 0.0 }
  0xb0   :  { %168 = vadd.xlane.f32.xlu1 %v167_v49  ;;  %171 = vadd.xlane.f32.xlu0 %v170_v52 }
  0xb4   :  { %174 = vadd.xlane.f32.xlu1 %v173_v28 }
 0x11d   :  { %v130_v29 = vpop.xlane.xlu0 %129 }
 0x11e   :  { %v176_v53 = vmul.f32 0.03125, %v130_v29 }
 0x120   :  { %v192_v56 = vadd.f32 1e-05, %v176_v53 }
 0x121   :  { %v133_v57 = vpop.xlane.xlu1 %132  ;;  %v136_v58 = vpop.xlane.xlu0 %135 }
 0x122   :  { %405 = vrsqrt.f32 %v192_v56  ;;  %v177_v59 = vmul.f32 0.03125, %v133_v57  ;;  %v178_v60 = vmul.f32 0.03125, %v136_v58 }
 0x124   :  { %v193_v61 = vadd.f32 1e-05, %v177_v59  ;;  %v194_v62 = vadd.f32 1e-05, %v178_v60 }
 0x125   :  { %v139_v63 = vpop.xlane.xlu1 %138  ;;  %v142_v2 = vpop.xlane.xlu0 %141 }
 0x126   :  { %407 = vrsqrt.f32 %v193_v61  ;;  %v179_v3 = vmul.f32 0.03125, %v139_v63  ;;  %v180_v4 = vmul.f32 0.03125, %v142_v2 }
 0x127   :  { %409 = vrsqrt.f32 %v194_v62 }
 0x128   :  { %v195_v5 = vadd.f32 1e-05, %v179_v3  ;;  %v196_v6 = vadd.f32 1e-05, %v180_v4 }
 0x129   :  { %v145_v7 = vpop.xlane.xlu1 %144  ;;  %v148_v8 = vpop.xlane.xlu0 %147 }
 0x12a   :  { %411 = vrsqrt.f32 %v195_v5  ;;  %v181_v9 = vmul.f32 0.03125, %v145_v7  ;;  %v182_v12 = vmul.f32 0.03125, %v148_v8 }
 0x12b   :  { %413 = vrsqrt.f32 %v196_v6 }
 0x12c   :  { %v197_v13 = vadd.f32 1e-05, %v181_v9  ;;  %v198_v14 = vadd.f32 1e-05, %v182_v12 }
 0x12d   :  { %v151_v15 = vpop.xlane.xlu1 %150  ;;  %v154_v18 = vpop.xlane.xlu0 %153 }
 0x12e   :  { %415 = vrsqrt.f32 %v197_v13  ;;  %v183_v19 = vmul.f32 0.03125, %v151_v15  ;;  %v184_v22 = vmul.f32 0.03125, %v154_v18 }
 0x12f   :  { %v406_v16 = vpop.eup %405  ;;  %417 = vrsqrt.f32 %v198_v14 }
 0x130   :  { %v224_v27 = vmul.f32 %v406_v16, %v551_v36  ;;  %v199_v30 = vadd.f32 1e-05, %v183_v19  ;;  %v200_v31 = vadd.f32 1e-05, %v184_v22 }
 0x131   :  { %v157_v33 = vpop.xlane.xlu1 %156  ;;  %v160_v34 = vpop.xlane.xlu0 %159 }
 0x132   :  { %v247_v20 = vmul.f32 %v644_v26, %v224_v27  ;;  %419 = vrsqrt.f32 %v199_v30  ;;  %v185_v38 = vmul.f32 0.03125, %v157_v33  ;;  %v186_v39 = vmul.f32 0.03125, %v160_v34 }
 0x133   :  { %v408_v40 = vpop.eup %407  ;;  %421 = vrsqrt.f32 %v200_v31 }
 0x134   :  { %v410_v41 = vpop.eup %409  ;;  %v270_v42 = vadd.f32 %v650_v32, %v247_v20  ;;  %v225_v36 = vmul.f32 %v408_v40, %v559_v44  ;;  %v201_v43 = vadd.f32 1e-05, %v185_v38  ;;  %v202_v46 = vadd.f32 1e-05, %v186_v39 }
 0x135   :  { %v226_v24 = vmul.f32 %v410_v41, %v553_v37  ;;  %v163_v48 = vpop.xlane.xlu1 %162  ;;  %v166_v49 = vpop.xlane.xlu0 %165 }
 0x136   :  { %v389_v50 = vpack.c.bf16 %v270_v42, %v270_v42  ;;  %v248_v51 = vmul.f32 %v644_v26, %v225_v36  ;;  %423 = vrsqrt.f32 %v201_v43  ;;  %v187_v52 = vmul.f32 0.03125, %v163_v48 }
 0x137   :  { %v412_v28 = vpop.eup %411  ;;  %v249_v29 = vmul.f32 %v644_v26, %v226_v24  ;;  %425 = vrsqrt.f32 %v202_v46  ;;  %v188_v53 = vmul.f32 0.03125, %v166_v49 }
 0x138   :  { %v414_v56 = vpop.eup %413  ;;  %351 = vst.msk [vmem:[%s766_s3] sm:$0xf] %vm350_vm1, %v389_v50  ;;  %v271_v37 = vadd.f32 %v650_v32, %v248_v51  ;;  %v227_v44 = vmul.f32 %v412_v28, %v561_v45  ;;  %v203_v57 = vadd.f32 1e-05, %v187_v52 }
 0x139   :  { %v272_v58 = vadd.f32 %v650_v32, %v249_v29  ;;  %v228_v59 = vmul.f32 %v414_v56, %v569_v54  ;;  %v204_v60 = vadd.f32 1e-05, %v188_v53  ;;  %v169_v61 = vpop.xlane.xlu1 %168  ;;  %v172_v62 = vpop.xlane.xlu0 %171 }
 0x13a   :  { %v390_v63 = vpack.c.bf16 %v271_v37, %v271_v37  ;;  %v250_v2 = vmul.f32 %v644_v26, %v227_v44  ;;  %427 = vrsqrt.f32 %v203_v57  ;;  %v189_v3 = vmul.f32 0.03125, %v169_v61 }
 0x13b   :  { %v416_v4 = vpop.eup %415  ;;  %v391_v5 = vpack.c.bf16 %v272_v58, %v272_v58  ;;  %v251_v6 = vmul.f32 %v644_v26, %v228_v59  ;;  %429 = vrsqrt.f32 %v204_v60  ;;  %v190_v7 = vmul.f32 0.03125, %v172_v62 }
 0x13c   :  { %v418_v45 = vpop.eup %417  ;;  %352 = vst.msk [vmem:[%s766_s3 + $0x4] sm:$0xf] %vm350_vm1, %v390_v63  ;;  %v273_v54 = vadd.f32 %v650_v32, %v250_v2  ;;  %v229_v8 = vmul.f32 %v416_v4, %v571_v55  ;;  %v205_v9 = vadd.f32 1e-05, %v189_v3 }
 0x13d   :  { %353 = vst.msk [vmem:[%s766_s3 + $0x8] sm:$0xf] %vm350_vm1, %v391_v5  ;;  %v274_v12 = vadd.f32 %v650_v32, %v251_v6  ;;  %v230_v13 = vmul.f32 %v418_v45, %v580_v0  ;;  %v206_v14 = vadd.f32 1e-05, %v190_v7  ;;  %v175_v15 = vpop.xlane.xlu1 %174 }
 0x13e   :  { %v392_v18 = vpack.c.bf16 %v273_v54, %v273_v54  ;;  %v252_v19 = vmul.f32 %v644_v26, %v229_v8  ;;  %431 = vrsqrt.f32 %v205_v9  ;;  %v191_v22 = vmul.f32 0.03125, %v175_v15 }
 0x13f   :  { %v420_v16 = vpop.eup %419  ;;  %v393_v27 = vpack.c.bf16 %v274_v12, %v274_v12  ;;  %v253_v55 = vmul.f32 %v644_v26, %v230_v13  ;;  %433 = vrsqrt.f32 %v206_v14 }
 0x140   :  { %v422_v30 = vpop.eup %421  ;;  %354 = vst.msk [vmem:[%s766_s3 + $0xc] sm:$0xf] %vm350_vm1, %v392_v18  ;;  %v275_v0 = vadd.f32 %v650_v32, %v252_v19  ;;  %v231_v31 = vmul.f32 %v420_v16, %v583_v1  ;;  %v207_v33 = vadd.f32 1e-05, %v191_v22 }
 0x141   :  { %355 = vst.msk [vmem:[%s766_s3 + $0x10] sm:$0xf] %vm350_vm1, %v393_v27  ;;  %v276_v34 = vadd.f32 %v650_v32, %v253_v55  ;;  %v232_v20 = vmul.f32 %v422_v30, %v592_v10 }
 0x142   :  { %v394_v38 = vpack.c.bf16 %v275_v0, %v275_v0  ;;  %v254_v39 = vmul.f32 %v644_v26, %v231_v31  ;;  %435 = vrsqrt.f32 %v207_v33 }
 0x143   :  { %v424_v40 = vpop.eup %423  ;;  %v395_v41 = vpack.c.bf16 %v276_v34, %v276_v34  ;;  %v255_v42 = vmul.f32 %v644_v26, %v232_v20 }
 0x144   :  { %v426_v36 = vpop.eup %425  ;;  %356 = vst.msk [vmem:[%s766_s3 + $0x14] sm:$0xf] %vm350_vm1, %v394_v38  ;;  %v277_v1 = vadd.f32 %v650_v32, %v254_v39  ;;  %v233_v43 = vmul.f32 %v424_v40, %v595_v11 }
 0x145   :  { %357 = vst.msk [vmem:[%s766_s3 + $0x18] sm:$0xf] %vm350_vm1, %v395_v41  ;;  %v278_v10 = vadd.f32 %v650_v32, %v255_v42  ;;  %v234_v46 = vmul.f32 %v426_v36, %v604_v23 }
 0x146   :  { %v396_v24 = vpack.c.bf16 %v277_v1, %v277_v1  ;;  %v256_v48 = vmul.f32 %v644_v26, %v233_v43 }
 0x147   :  { %v428_v49 = vpop.eup %427  ;;  %v397_v50 = vpack.c.bf16 %v278_v10, %v278_v10  ;;  %v257_v51 = vmul.f32 %v644_v26, %v234_v46 }
 0x148   :  { %v430_v52 = vpop.eup %429  ;;  %358 = vst.msk [vmem:[%s766_s3 + $0x1c] sm:$0xf] %vm350_vm1, %v396_v24  ;;  %v279_v11 = vadd.f32 %v650_v32, %v256_v48  ;;  %v235_v28 = vmul.f32 %v428_v49, %v607_v17 }
 0x149   :  { %359 = vst.msk [vmem:[%s766_s3 + $0x20] sm:$0xf] %vm350_vm1, %v397_v50  ;;  %v280_v23 = vadd.f32 %v650_v32, %v257_v51  ;;  %v236_v29 = vmul.f32 %v430_v52, %v616_v35 }
 0x14a   :  { %v398_v53 = vpack.c.bf16 %v279_v11, %v279_v11  ;;  %v258_v56 = vmul.f32 %v644_v26, %v235_v28 }
 0x14b   :  { %v432_v37 = vpop.eup %431  ;;  %v399_v44 = vpack.c.bf16 %v280_v23, %v280_v23  ;;  %v259_v57 = vmul.f32 %v644_v26, %v236_v29 }
 0x14c   :  { %v434_v58 = vpop.eup %433  ;;  %360 = vst.msk [vmem:[%s766_s3 + $0x24] sm:$0xf] %vm350_vm1, %v398_v53  ;;  %v281_v17 = vadd.f32 %v650_v32, %v258_v56  ;;  %v237_v59 = vmul.f32 %v432_v37, %v619_v21 }
 0x14d   :  { %361 = vst.msk [vmem:[%s766_s3 + $0x28] sm:$0xf] %vm350_vm1, %v399_v44  ;;  %v282_v35 = vadd.f32 %v650_v32, %v259_v57  ;;  %v238_v60 = vmul.f32 %v434_v58, %v628_v47 }
 0x14e   :  { %v400_v61 = vpack.c.bf16 %v281_v17, %v281_v17  ;;  %v260_v62 = vmul.f32 %v644_v26, %v237_v59 }
 0x14f   :  { %v436_v63 = vpop.eup %435  ;;  %v401_v2 = vpack.c.bf16 %v282_v35, %v282_v35  ;;  %v261_v3 = vmul.f32 %v644_v26, %v238_v60 }
 0x150   :  { %362 = vst.msk [vmem:[%s766_s3 + $0x2c] sm:$0xf] %vm350_vm1, %v400_v61  ;;  %v283_v21 = vadd.f32 %v650_v32, %v260_v62  ;;  %v239_v4 = vmul.f32 %v436_v63, %v631_v25 }
 0x151   :  { %363 = vst.msk [vmem:[%s766_s3 + $0x30] sm:$0xf] %vm350_vm1, %v401_v2  ;;  %v284_v47 = vadd.f32 %v650_v32, %v261_v3 }
 0x152   :  { %v402_v5 = vpack.c.bf16 %v283_v21, %v283_v21  ;;  %v262_v6 = vmul.f32 %v644_v26, %v239_v4 }
 0x153   :  { %v403_v7 = vpack.c.bf16 %v284_v47, %v284_v47 }
 0x154   :  { %364 = vst.msk [vmem:[%s766_s3 + $0x34] sm:$0xf] %vm350_vm1, %v402_v5  ;;  %v285_v45 = vadd.f32 %v650_v32, %v262_v6 }
 0x155   :  { %365 = vst.msk [vmem:[%s766_s3 + $0x38] sm:$0xf] %vm350_vm1, %v403_v7 }
 0x156   :  { %v404_v25 = vpack.c.bf16 %v285_v45, %v285_v45 }
 0x158   :  { %366 = vst.msk [vmem:[%s766_s3 + $0x3c] sm:$0xf] %vm350_vm1, %v404_v25 }

// kernel: basic_layer_forward.7
= control target key start
LH: loop header
LB: loop body
LE: loop exit
PB: predicated region body
PF: predicated region fallthrough
CT: control target
= control target key end

     0   :  { %v454_v0 = vmov 0.0   ;;  %vm455_vm0 = vmmov 0   ;;  %vm42_vm1 = vcmask 130048   ;;  %v456_v4 = vmov 0   ;;  %s565_s0 = inlined_call_operand.vmem [shape: bf16[4,16,64], index: 0, kind: input, shape index: {}]   ;;  %s566_s1 = inlined_call_operand.vmem [shape: bf16[4,16,16], index: 1, kind: input, shape index: {}]   ;;  %s567_s2 = inlined_call_operand.vmem [shape: f32[4,16,1], index: 2, kind: input, shape index: {}]   ;;  %s568_s3 = inlined_call_operand.vmem [shape: bf16[4,16,64], index: 3, kind: output, shape index: {}]  }
   0x1   :  { %417 = vmatprep.subr.bf16.mxu0 %v454_v0  ;;  %423 = vmatprep.subr.bf16.mxu1 %v454_v0  ;;  %v446_v1 = vld [vmem:[%s565_s0] sm:$0xff]   ;;  %v447_v2 = vld [vmem:[%s565_s0 + $0x8] sm:$0xff]   ;;  %v450_v6 = vld [vmem:[%s565_s0 + $0x10] sm:$0xff]   ;;  %vm95_vm2 = vcmask 519168  }
   0x2   :  { %419 = vmatprep.mubr.msk.bf16.mxu0 %vm455_vm0, %v454_v0  ;;  %425 = vmatprep.mubr.msk.bf16.mxu1 %vm455_vm0, %v454_v0  ;;  %v448_v3 = vld [vmem:[%s566_s1] sm:$0xff]   ;;  %v449_v5 = vld [vmem:[%s566_s1 + $0x8] sm:$0xff]   ;;  %v451_v7 = vld [vmem:[%s565_s0 + $0x18] sm:$0xff]  }
   0x3   :  { %418 = vmatpush3.bf16.msra.mxu0 %v446_v1  ;;  %445 = vset.pattern.permute.xlu1 %v456_v4  ;;  %v366_v8 = vld [vmem:[%s567_s2 + $0x10] sm:$0xff]  ;;  %v19_v9 = vld [vmem:[%s567_s2] sm:$0xff]  ;;  %v453_v11 = vld [vmem:[%s566_s1 + $0x18] sm:$0xff]  }
   0x4   :  { %424 = vmatpush3.bf16.msra.mxu1 %v447_v2  ;;  %429 = vmatprep.subr.bf16.mxu0 %v454_v0  ;;  %v452_v10 = vld [vmem:[%s566_s1 + $0x10] sm:$0xff]   ;;  %v367_v12 = vld [vmem:[%s567_s2 + $0x18] sm:$0xff]  ;;  %v20_v13 = vld [vmem:[%s567_s2 + $0x8] sm:$0xff] }
   0x5   :  { %435 = vmatprep.subr.bf16.mxu1 %v454_v0  ;;  %444 = vset.pattern.permute.xlu0 %v456_v4  ;;  %v380_v14 = vld [vmem:[%s567_s2 + $0x28] sm:$0xff]  ;;  %v379_v15 = vld [vmem:[%s567_s2 + $0x20] sm:$0xff]  ;;  %v393_v16 = vld [vmem:[%s567_s2 + $0x38] sm:$0xff] }
   0x6   :  { %420 = vmatmul.mubr.msk.bf16.vlgmr.msra.gmra.mxu0 %vm42_vm1, %v448_v3  ;;  %109 = vperm.xlu1 %445, %v366_v8   ;;  %v392_v17 = vld [vmem:[%s567_s2 + $0x30] sm:$0xff] }
   0x7   :  { %426 = vmatmul.mubr.msk.bf16.vlgmr.msra.gmra.mxu1 %vm42_vm1, %v449_v5  ;;  %430 = vmatpush3.bf16.msra.mxu0 %v450_v6 }
   0x8   :  { %436 = vmatpush3.bf16.msra.mxu1 %v451_v7  ;;  %431 = vmatprep.mubr.msk.bf16.mxu0 %vm455_vm0, %v454_v0 }
   0x9   :  { %437 = vmatprep.mubr.msk.bf16.mxu1 %vm455_vm0, %v454_v0  ;;  %23 = vperm.xlu0 %444, %v19_v9  }
   0xa   :  { %114 = vperm.xlu1 %445, %v367_v12  }
   0xd   :  { %28 = vperm.xlu0 %444, %v20_v13  }
   0xe   :  { %432 = vmatmul.mubr.msk.bf16.vlgmr.msra.gmra.mxu0 %vm42_vm1, %v452_v10  ;;  %199 = vperm.xlu1 %445, %v380_v14  }
   0xf   :  { %438 = vmatmul.mubr.msk.bf16.vlgmr.msra.gmra.mxu1 %vm42_vm1, %v453_v11 }
  0x11   :  { %194 = vperm.xlu0 %444, %v379_v15  }
  0x12   :  { %284 = vperm.xlu1 %445, %v393_v16  }
  0x15   :  { %279 = vperm.xlu0 %444, %v392_v17  }
  0x81   :  { %v110_v19 = vpop.permute.xlu1 %109 }
  0x84   :  { %v24_v18 = vpop.permute.xlu0 %23 }
  0x85   :  { %v115_v22 = vpop.permute.xlu1 %114 }
  0x88   :  { %v29_v20 = vpop.permute.xlu0 %28 }
  0x89   :  { %v200_v36 = vpop.permute.xlu1 %199 }
  0x8c   :  { %v195_v27 = vpop.permute.xlu0 %194 }
  0x8d   :  { %v285_v50 = vpop.permute.xlu1 %284 }
  0x90   :  { %v280_v41 = vpop.permute.xlu0 %279 }
  0xc6   :  { %v80_v21 = vpop.f32.mrf.mxu0 }
  0xc7   :  { %v81_v23 = vadd.f32 %v80_v21, %v24_v18  ;;  %v165_v24 = vpop.f32.mrf.mxu1 }
  0xc8   :  { %v166_v25 = vadd.f32 %v165_v24, %v110_v19  ;;  %v421_v26 = vpop.f32.mrf.mxu0 }
  0xc9   :  { %v401_v28 = vpack.c.bf16 %v81_v23, %v81_v23  ;;  %v427_v29 = vpop.f32.mrf.mxu1 }
  0xca   :  { %v403_v30 = vpack.c.bf16 %v166_v25, %v166_v25  ;;  %v83_v31 = vpop.f32.mrf.mxu0 }
  0xcb   :  { %96 = vst.msk [vmem:[%s568_s3] sm:$0xf] %vm95_vm2, %v401_v28  ;;  %v84_v32 = vadd.f32 %v83_v31, %v29_v20  ;;  %v168_v33 = vpop.f32.mrf.mxu1 }
  0xcc   :  { %373 = vst.msk [vmem:[%s568_s3 + $0x8] sm:$0xf] %vm95_vm2, %v403_v30  ;;  %v169_v34 = vadd.f32 %v168_v33, %v115_v22  ;;  %v422_v35 = vpop.f32.mrf.mxu0 }
  0xcd   :  { %v402_v37 = vpack.c.bf16 %v84_v32, %v84_v32  ;;  %v428_v38 = vpop.f32.mrf.mxu1 }
  0xce   :  { %v404_v39 = vpack.c.bf16 %v169_v34, %v169_v34  ;;  %v250_v40 = vpop.f32.mrf.mxu0 }
  0xcf   :  { %97 = vst.msk [vmem:[%s568_s3 + $0x4] sm:$0xf] %vm95_vm2, %v402_v37  ;;  %v251_v42 = vadd.f32 %v250_v40, %v195_v27  ;;  %v335_v43 = vpop.f32.mrf.mxu1 }
  0xd0   :  { %374 = vst.msk [vmem:[%s568_s3 + $0xc] sm:$0xf] %vm95_vm2, %v404_v39  ;;  %v336_v44 = vadd.f32 %v335_v43, %v280_v41  ;;  %v433_v45 = vpop.f32.mrf.mxu0 }
  0xd1   :  { %v405_v46 = vpack.c.bf16 %v251_v42, %v251_v42  ;;  %v439_v47 = vpop.f32.mrf.mxu1 }
  0xd2   :  { %v407_v48 = vpack.c.bf16 %v336_v44, %v336_v44  ;;  %v253_v49 = vpop.f32.mrf.mxu0 }
  0xd3   :  { %386 = vst.msk [vmem:[%s568_s3 + $0x10] sm:$0xf] %vm95_vm2, %v405_v46  ;;  %v254_v51 = vadd.f32 %v253_v49, %v200_v36  ;;  %v338_v52 = vpop.f32.mrf.mxu1 }
  0xd4   :  { %399 = vst.msk [vmem:[%s568_s3 + $0x18] sm:$0xf] %vm95_vm2, %v407_v48  ;;  %v339_v53 = vadd.f32 %v338_v52, %v285_v50  ;;  %v434_v54 = vpop.f32.mrf.mxu0 }
  0xd5   :  { %v406_v55 = vpack.c.bf16 %v254_v51, %v254_v51  ;;  %v440_v56 = vpop.f32.mrf.mxu1 }
  0xd6   :  { %v408_v57 = vpack.c.bf16 %v339_v53, %v339_v53 }
  0xd7   :  { %387 = vst.msk [vmem:[%s568_s3 + $0x14] sm:$0xf] %vm95_vm2, %v406_v55 }
  0xd8   :  { %400 = vst.msk [vmem:[%s568_s3 + $0x1c] sm:$0xf] %vm95_vm2, %v408_v57 }

// kernel: basic_layer_forward.8
= control target key start
LH: loop header
LB: loop body
LE: loop exit
PB: predicated region body
PF: predicated region fallthrough
CT: control target
= control target key end

     0   :  { %vm98_vm0 = vcmask 261120   ;;  %vm434_vm1 = vcmask 257024   ;;  %s2069_s0 = inlined_call_operand.vmem [shape: f32[128,32], index: 0, kind: input, shape index: {}, may-alias: {0,8}]   ;;  %s2070_s1 = inlined_call_operand.vmem [shape: bf16[128,32], index: 1, kind: input, shape index: {}]   ;;  %s2071_s4 = inlined_call_operand.vmem [shape: bf16[32,128], index: 4, kind: input, shape index: {}]   ;;  %s2072_s2 = inlined_call_operand.vmem [shape: f32[1,32], index: 2, kind: input, shape index: {}]   ;;  %s2073_s3 = inlined_call_operand.vmem [shape: f32[1,32], index: 3, kind: input, shape index: {}]   ;;  %s2074_s6 = inlined_call_operand.vmem [shape: bf16[128,32], index: 6, kind: input, shape index: {}]   ;;  %s2075_s5 = inlined_call_operand.vmem [shape: f32[1,128], index: 5, kind: input, shape index: {}]   ;;  %s2076_s7 = inlined_call_operand.vmem [shape: f32[1,32], index: 7, kind: input, shape index: {}]   ;;  %s2077_s8 = inlined_call_operand.vmem [shape: f32[128,32], index: 8, kind: output, shape index: {}, may-alias: {0,8}]  }
   0x1   :  { %v34_v0 = vld [vmem:[%s2069_s0] sm:$0xff]  ;;  %v36_v2 = vld [vmem:[%s2069_s0 + $0x10] sm:$0xff]  ;;  %v1217_v4 = vld [vmem:[%s2070_s1 + $0x8] sm:$0xff]  }
   0x2   :  { %v1186_v1 = vld [vmem:[%s2070_s1] sm:$0xff]   ;;  %v35_v5 = vld [vmem:[%s2069_s0 + $0x8] sm:$0xff]  ;;  %v37_v7 = vld [vmem:[%s2069_s0 + $0x18] sm:$0xff]  ;;  %v1191_v8 = vunpack.c.l.bf16 %v1217_v4  ;;  %v1192_v9 = vunpack.c.h.bf16 %v1217_v4 }
   0x3   :  { %v1187_v3 = vunpack.c.l.bf16 %v1186_v1  ;;  %v1188_v6 = vunpack.c.h.bf16 %v1186_v1  ;;  %v38_v10 = vld [vmem:[%s2069_s0 + $0x20] sm:$0xff]  ;;  %v1218_v11 = vld [vmem:[%s2070_s1 + $0x10] sm:$0xff]   ;;  %v39_v12 = vld [vmem:[%s2069_s0 + $0x28] sm:$0xff] }
   0x4   :  { %v1195_v15 = vunpack.c.l.bf16 %v1218_v11  ;;  %v1196_v16 = vunpack.c.h.bf16 %v1218_v11  ;;  %v40_v17 = vld [vmem:[%s2069_s0 + $0x30] sm:$0xff]  ;;  %v1219_v18 = vld [vmem:[%s2070_s1 + $0x18] sm:$0xff]   ;;  %v1487_v20 = vadd.f32 %v1191_v8, %v36_v2  ;;  %v1489_v21 = vadd.f32 %v1192_v9, %v37_v7  ;;  %v1220_v24 = vld [vmem:[%s2070_s1 + $0x20] sm:$0xff]  }
   0x5   :  { %v1474_v13 = vadd.f32 %v1187_v3, %v34_v0  ;;  %v1476_v14 = vadd.f32 %v1188_v6, %v35_v5  ;;  %v41_v19 = vld [vmem:[%s2069_s0 + $0x38] sm:$0xff]  ;;  %v1199_v22 = vunpack.c.l.bf16 %v1219_v18  ;;  %v1200_v23 = vunpack.c.h.bf16 %v1219_v18  ;;  %v1221_v28 = vld [vmem:[%s2070_s1 + $0x28] sm:$0xff]   ;;  %v42_v32 = vld [vmem:[%s2069_s0 + $0x40] sm:$0xff] }
   0x6   :  { %v1500_v26 = vadd.f32 %v1195_v15, %v38_v10  ;;  %v1502_v27 = vadd.f32 %v1196_v16, %v39_v12  ;;  %v105_v29 = vsel %vm98_vm0, %v1487_v20, 0.0  ;;  %356 = vst.msk [vmem:[#allocation2 + $0x10] sm:$0xff] %vm98_vm0, %v1487_v20  ;;  %357 = vst.msk [vmem:[#allocation2 + $0x18] sm:$0xff] %vm98_vm0, %v1489_v21  ;;  %v43_v33 = vld [vmem:[%s2069_s0 + $0x48] sm:$0xff]  ;;  %v1222_v34 = vld [vmem:[%s2070_s1 + $0x30] sm:$0xff]   ;;  %v1203_v36 = vunpack.c.l.bf16 %v1220_v24 }
   0x7   :  { %v99_v25 = vsel %vm98_vm0, %v1474_v13, 0.0  ;;  %354 = vst.msk [vmem:[#allocation2] sm:$0xff] %vm98_vm0, %v1474_v13  ;;  %355 = vst.msk [vmem:[#allocation2 + $0x8] sm:$0xff] %vm98_vm0, %v1476_v14  ;;  %v1513_v30 = vadd.f32 %v1199_v22, %v40_v17  ;;  %v1515_v31 = vadd.f32 %v1200_v23, %v41_v19  ;;  %106 = vadd.xlane.f32.xlu1 %v105_v29  ;;  %v102_v35 = vsel %vm98_vm0, %v1476_v14, 0.0  ;;  %v44_v38 = vld [vmem:[%s2069_s0 + $0x50] sm:$0xff]  ;;  %v45_v39 = vld [vmem:[%s2069_s0 + $0x58] sm:$0xff] }
   0x8   :  { %100 = vadd.xlane.f32.xlu0 %v99_v25  ;;  %358 = vst.msk [vmem:[#allocation2 + $0x20] sm:$0xff] %vm98_vm0, %v1500_v26  ;;  %359 = vst.msk [vmem:[#allocation2 + $0x28] sm:$0xff] %vm98_vm0, %v1502_v27  ;;  %v1204_v37 = vunpack.c.h.bf16 %v1220_v24  ;;  %v1223_v40 = vld [vmem:[%s2070_s1 + $0x38] sm:$0xff]   ;;  %v108_v41 = vsel %vm98_vm0, %v1489_v21, 0.0  ;;  %v1207_v42 = vunpack.c.l.bf16 %v1221_v28  ;;  %v1208_v43 = vunpack.c.h.bf16 %v1221_v28  ;;  %v46_v44 = vld [vmem:[%s2069_s0 + $0x60] sm:$0xff] }
   0x9   :  { %360 = vst.msk [vmem:[#allocation2 + $0x30] sm:$0xff] %vm98_vm0, %v1513_v30  ;;  %361 = vst.msk [vmem:[#allocation2 + $0x38] sm:$0xff] %vm98_vm0, %v1515_v31  ;;  %v47_v45 = vld [vmem:[%s2069_s0 + $0x68] sm:$0xff]  ;;  %v1553_v46 = vadd.f32 %v1203_v36, %v42_v32  ;;  %v1211_v48 = vunpack.c.l.bf16 %v1222_v34  ;;  %v1212_v49 = vunpack.c.h.bf16 %v1222_v34  ;;  %v48_v50 = vld [vmem:[%s2069_s0 + $0x70] sm:$0xff]  ;;  %v1215_v54 = vunpack.c.l.bf16 %v1223_v40 }
   0xa   :  { %v1555_v47 = vadd.f32 %v1204_v37, %v43_v33  ;;  %v49_v51 = vld [vmem:[%s2069_s0 + $0x78] sm:$0xff]  ;;  %v1563_v52 = vadd.f32 %v1207_v42, %v44_v38  ;;  %v1565_v53 = vadd.f32 %v1208_v43, %v45_v39  ;;  %v1216_v55 = vunpack.c.h.bf16 %v1223_v40 }
   0xb   :  { %109 = vadd.xlane.f32.xlu1 %v108_v41  ;;  %v111_v56 = vsel %vm98_vm0, %v1500_v26, 0.0  ;;  %362 = vst.msk [vmem:[#allocation2 + $0x40] sm:$0xff] %vm98_vm0, %v1553_v46  ;;  %v1573_v57 = vadd.f32 %v1211_v48, %v46_v44  ;;  %v1575_v58 = vadd.f32 %v1212_v49, %v47_v45  ;;  %v114_v59 = vsel %vm98_vm0, %v1502_v27, 0.0 }
   0xc   :  { %103 = vadd.xlane.f32.xlu0 %v102_v35  ;;  %363 = vst.msk [vmem:[#allocation2 + $0x48] sm:$0xff] %vm98_vm0, %v1555_v47  ;;  %364 = vst.msk [vmem:[#allocation2 + $0x50] sm:$0xff] %vm98_vm0, %v1563_v52  ;;  %v1583_v60 = vadd.f32 %v1215_v54, %v48_v50  ;;  %v1585_v61 = vadd.f32 %v1216_v55, %v49_v51  ;;  %v117_v62 = vsel %vm98_vm0, %v1513_v30, 0.0  ;;  %v120_v63 = vsel %vm98_vm0, %v1515_v31, 0.0 }
   0xd   :  { %365 = vst.msk [vmem:[#allocation2 + $0x58] sm:$0xff] %vm98_vm0, %v1565_v53  ;;  %366 = vst.msk [vmem:[#allocation2 + $0x60] sm:$0xff] %vm98_vm0, %v1573_v57  ;;  %v123_v0 = vsel %vm98_vm0, %v1553_v46, 0.0  ;;  %v126_v1 = vsel %vm98_vm0, %v1555_v47, 0.0  ;;  %v129_v2 = vsel %vm98_vm0, %v1563_v52, 0.0  ;;  %v132_v3 = vsel %vm98_vm0, %v1565_v53, 0.0 }
   0xe   :  { %367 = vst.msk [vmem:[#allocation2 + $0x68] sm:$0xff] %vm98_vm0, %v1575_v58  ;;  %368 = vst.msk [vmem:[#allocation2 + $0x70] sm:$0xff] %vm98_vm0, %v1583_v60  ;;  %v135_v4 = vsel %vm98_vm0, %v1573_v57, 0.0  ;;  %v138_v5 = vsel %vm98_vm0, %v1575_v58, 0.0  ;;  %v141_v6 = vsel %vm98_vm0, %v1583_v60, 0.0  ;;  %v144_v7 = vsel %vm98_vm0, %v1585_v61, 0.0 }
   0xf   :  { %369 = vst.msk [vmem:[#allocation2 + $0x78] sm:$0xff] %vm98_vm0, %v1585_v61  ;;  %115 = vadd.xlane.f32.xlu1 %v114_v59 }
  0x10   :  { %112 = vadd.xlane.f32.xlu0 %v111_v56 }
  0x13   :  { %121 = vadd.xlane.f32.xlu1 %v120_v63 }
  0x14   :  { %118 = vadd.xlane.f32.xlu0 %v117_v62 }
  0x17   :  { %127 = vadd.xlane.f32.xlu1 %v126_v1 }
  0x18   :  { %124 = vadd.xlane.f32.xlu0 %v123_v0 }
  0x1b   :  { %133 = vadd.xlane.f32.xlu1 %v132_v3 }
  0x1c   :  { %130 = vadd.xlane.f32.xlu0 %v129_v2 }
  0x1f   :  { %139 = vadd.xlane.f32.xlu1 %v138_v5 }
  0x20   :  { %136 = vadd.xlane.f32.xlu0 %v135_v4 }
  0x23   :  { %145 = vadd.xlane.f32.xlu1 %v144_v7 }
  0x24   :  { %142 = vadd.xlane.f32.xlu0 %v141_v6 }
  0x90   :  { %v107_v10 = vpop.xlane.xlu1 %106 }
  0x91   :  { %v101_v8 = vpop.xlane.xlu0 %100  ;;  %v150_v11 = vmul.f32 0.03125, %v107_v10 }
  0x92   :  { %v148_v9 = vmul.f32 0.03125, %v101_v8 }
  0x93   :  { %v1619_v15 = vsub.f32 %v1487_v20, %v150_v11 }
  0x94   :  { %v1616_v12 = vsub.f32 %v1474_v13, %v148_v9  ;;  %v110_v18 = vpop.xlane.xlu1 %109 }
  0x95   :  { %v104_v16 = vpop.xlane.xlu0 %103  ;;  %v151_v22 = vmul.f32 0.03125, %v110_v18  ;;  %v182_v23 = vmul.f32 %v1619_v15, %v1619_v15 }
  0x96   :  { %v149_v17 = vmul.f32 0.03125, %v104_v16  ;;  %v180_v19 = vmul.f32 %v1616_v12, %v1616_v12 }
  0x97   :  { %v1630_v13 = vsub.f32 %v1489_v21, %v151_v22  ;;  %v202_v32 = vsel %vm98_vm0, %v182_v23, 0.0 }
  0x98   :  { %v1626_v24 = vsub.f32 %v1476_v14, %v149_v17  ;;  %v196_v25 = vsel %vm98_vm0, %v180_v19, 0.0  ;;  %v116_v29 = vpop.xlane.xlu1 %115 }
  0x99   :  { %197 = vadd.xlane.f32.xlu0 %v196_v25  ;;  %v113_v20 = vpop.xlane.xlu0 %112  ;;  %v153_v34 = vmul.f32 0.03125, %v116_v29  ;;  %v183_v35 = vmul.f32 %v1630_v13, %v1630_v13 }
  0x9a   :  { %v152_v28 = vmul.f32 0.03125, %v113_v20  ;;  %v181_v33 = vmul.f32 %v1626_v24, %v1626_v24 }
  0x9b   :  { %v1642_v21 = vsub.f32 %v1502_v27, %v153_v34  ;;  %v205_v40 = vsel %vm98_vm0, %v183_v35, 0.0  ;;  %v1320_v35 = vld [vmem:[%s2071_s4] sm:$0xff]  }
  0x9c   :  { %v1638_v14 = vsub.f32 %v1500_v26, %v152_v28  ;;  %v199_v36 = vsel %vm98_vm0, %v181_v33, 0.0  ;;  %v122_v39 = vpop.xlane.xlu1 %121 }
  0x9d   :  { %203 = vadd.xlane.f32.xlu0 %v202_v32  ;;  %200 = vadd.xlane.f32.xlu1 %v199_v36  ;;  %v119_v37 = vpop.xlane.xlu0 %118  ;;  %v155_v42 = vmul.f32 0.03125, %v122_v39  ;;  %v185_v26 = vmul.f32 %v1642_v21, %v1642_v21 }
  0x9e   :  { %v154_v38 = vmul.f32 0.03125, %v119_v37  ;;  %v184_v41 = vmul.f32 %v1638_v14, %v1638_v14 }
  0x9f   :  { %v1654_v44 = vsub.f32 %v1515_v31, %v155_v42  ;;  %v211_v50 = vsel %vm98_vm0, %v185_v26, 0.0 }
  0xa0   :  { %v1650_v43 = vsub.f32 %v1513_v30, %v154_v38  ;;  %v208_v27 = vsel %vm98_vm0, %v184_v41, 0.0  ;;  %v128_v49 = vpop.xlane.xlu1 %127 }
  0xa1   :  { %206 = vadd.xlane.f32.xlu1 %v205_v40  ;;  %209 = vadd.xlane.f32.xlu0 %v208_v27  ;;  %v125_v45 = vpop.xlane.xlu0 %124  ;;  %v157_v54 = vmul.f32 0.03125, %v128_v49  ;;  %v187_v30 = vmul.f32 %v1654_v44, %v1654_v44 }
  0xa2   :  { %v156_v48 = vmul.f32 0.03125, %v125_v45  ;;  %v186_v51 = vmul.f32 %v1650_v43, %v1650_v43 }
  0xa3   :  { %v1666_v56 = vsub.f32 %v1555_v47, %v157_v54  ;;  %v217_v0 = vsel %vm98_vm0, %v187_v30, 0.0 }
  0xa4   :  { %v1662_v55 = vsub.f32 %v1553_v46, %v156_v48  ;;  %v214_v31 = vsel %vm98_vm0, %v186_v51, 0.0  ;;  %v134_v63 = vpop.xlane.xlu1 %133 }
  0xa5   :  { %212 = vadd.xlane.f32.xlu1 %v211_v50  ;;  %215 = vadd.xlane.f32.xlu0 %v214_v31  ;;  %v131_v59 = vpop.xlane.xlu0 %130  ;;  %v159_v2 = vmul.f32 0.03125, %v134_v63  ;;  %v189_v46 = vmul.f32 %v1666_v56, %v1666_v56 }
  0xa6   :  { %v158_v62 = vmul.f32 0.03125, %v131_v59  ;;  %v188_v1 = vmul.f32 %v1662_v55, %v1662_v55 }
  0xa7   :  { %v1678_v4 = vsub.f32 %v1565_v53, %v159_v2  ;;  %v223_v8 = vsel %vm98_vm0, %v189_v46, 0.0 }
  0xa8   :  { %v1674_v3 = vsub.f32 %v1563_v52, %v158_v62  ;;  %v220_v47 = vsel %vm98_vm0, %v188_v1, 0.0  ;;  %v140_v7 = vpop.xlane.xlu1 %139 }
  0xa9   :  { %218 = vadd.xlane.f32.xlu1 %v217_v0  ;;  %221 = vadd.xlane.f32.xlu0 %v220_v47  ;;  %v137_v5 = vpop.xlane.xlu0 %136  ;;  %v161_v10 = vmul.f32 0.03125, %v140_v7  ;;  %v191_v52 = vmul.f32 %v1678_v4, %v1678_v4 }
  0xaa   :  { %v160_v6 = vmul.f32 0.03125, %v137_v5  ;;  %v190_v9 = vmul.f32 %v1674_v3, %v1674_v3 }
  0xab   :  { %v1690_v16 = vsub.f32 %v1575_v58, %v161_v10  ;;  %v229_v22 = vsel %vm98_vm0, %v191_v52, 0.0  ;;  %v1726_v10 = vld [vmem:[%s2073_s3] ss:$0 sm:$0xff] }
  0xac   :  { %v1686_v11 = vsub.f32 %v1573_v57, %v160_v6  ;;  %v226_v53 = vsel %vm98_vm0, %v190_v9, 0.0  ;;  %v146_v19 = vpop.xlane.xlu1 %145  ;;  %v1720_v6 = vld [vmem:[%s2072_s2] ss:$0 sm:$0xff] }
  0xad   :  { %224 = vadd.xlane.f32.xlu1 %v223_v8  ;;  %227 = vadd.xlane.f32.xlu0 %v226_v53  ;;  %v143_v17 = vpop.xlane.xlu0 %142  ;;  %v163_v25 = vmul.f32 0.03125, %v146_v19  ;;  %v193_v57 = vmul.f32 %v1690_v16, %v1690_v16 }
  0xae   :  { %v162_v18 = vmul.f32 0.03125, %v143_v17  ;;  %v192_v23 = vmul.f32 %v1686_v11, %v1686_v11 }
  0xaf   :  { %v1702_v28 = vsub.f32 %v1585_v61, %v163_v25  ;;  %v235_v29 = vsel %vm98_vm0, %v193_v57, 0.0  ;;  %v1319_v61 = vld [vmem:[%s2071_s4 + $0x8] sm:$0xff]  }
  0xb0   :  { %v1698_v20 = vsub.f32 %v1583_v60, %v162_v18  ;;  %v232_v58 = vsel %vm98_vm0, %v192_v23, 0.0  ;;  %1250 = vmatprep.subr.bf16.mxu0 %v1319_v61 }
  0xb1   :  { %230 = vadd.xlane.f32.xlu1 %v229_v22  ;;  %233 = vadd.xlane.f32.xlu0 %v232_v58  ;;  %v195_v33 = vmul.f32 %v1702_v28, %v1702_v28 }
  0xb2   :  { %v194_v32 = vmul.f32 %v1698_v20, %v1698_v20  ;;  %1251 = vmatpush3.bf16.msra.mxu0 %v1319_v61 }
  0xb3   :  { %v241_v60 = vsel %vm98_vm0, %v195_v33, 0.0  ;;  %1252 = vmatprep.subr.bf16.mxu0 %v1320_v35 }
  0xb4   :  { %v238_v34 = vsel %vm98_vm0, %v194_v32, 0.0 }
  0xb5   :  { %236 = vadd.xlane.f32.xlu1 %v235_v29  ;;  %239 = vadd.xlane.f32.xlu0 %v238_v34 }
  0xb6   :  { %1253 = vmatpush3.bf16.msra.mxu0 %v1320_v35 }
  0xb9   :  { %242 = vadd.xlane.f32.xlu1 %v241_v60 }
 0x122   :  { %v198_v36 = vpop.xlane.xlu0 %197 }
 0x123   :  { %v244_v37 = vmul.f32 0.03125, %v198_v36 }
 0x125   :  { %v260_v38 = vadd.f32 1e-05, %v244_v37 }
 0x126   :  { %v201_v39 = vpop.xlane.xlu1 %200  ;;  %v204_v40 = vpop.xlane.xlu0 %203 }
 0x127   :  { %1337 = vrsqrt.f32 %v260_v38  ;;  %v245_v41 = vmul.f32 0.03125, %v201_v39  ;;  %v246_v42 = vmul.f32 0.03125, %v204_v40 }
 0x129   :  { %v261_v26 = vadd.f32 1e-05, %v245_v41  ;;  %v262_v27 = vadd.f32 1e-05, %v246_v42 }
 0x12a   :  { %v207_v45 = vpop.xlane.xlu1 %206  ;;  %v210_v48 = vpop.xlane.xlu0 %209 }
 0x12b   :  { %1339 = vrsqrt.f32 %v261_v26  ;;  %v247_v49 = vmul.f32 0.03125, %v207_v45  ;;  %v248_v50 = vmul.f32 0.03125, %v210_v48 }
 0x12c   :  { %1341 = vrsqrt.f32 %v262_v27 }
 0x12d   :  { %v263_v51 = vadd.f32 1e-05, %v247_v49  ;;  %v264_v54 = vadd.f32 1e-05, %v248_v50 }
 0x12e   :  { %v213_v30 = vpop.xlane.xlu1 %212  ;;  %v216_v31 = vpop.xlane.xlu0 %215 }
 0x12f   :  { %1343 = vrsqrt.f32 %v263_v51  ;;  %v249_v59 = vmul.f32 0.03125, %v213_v30  ;;  %v250_v62 = vmul.f32 0.03125, %v216_v31 }
 0x130   :  { %1345 = vrsqrt.f32 %v264_v54 }
 0x131   :  { %v265_v63 = vadd.f32 1e-05, %v249_v59  ;;  %v266_v0 = vadd.f32 1e-05, %v250_v62 }
 0x132   :  { %v219_v1 = vpop.xlane.xlu1 %218  ;;  %v222_v2 = vpop.xlane.xlu0 %221 }
 0x133   :  { %1347 = vrsqrt.f32 %v265_v63  ;;  %v251_v46 = vmul.f32 0.03125, %v219_v1  ;;  %v252_v47 = vmul.f32 0.03125, %v222_v2 }
 0x134   :  { %v1338_v5 = vpop.eup %1337  ;;  %1349 = vrsqrt.f32 %v266_v0 }
 0x135   :  { %v292_v7 = vmul.f32 %v1338_v5, %v1616_v12  ;;  %v267_v8 = vadd.f32 1e-05, %v251_v46  ;;  %v268_v9 = vadd.f32 1e-05, %v252_v47 }
 0x136   :  { %v225_v52 = vpop.xlane.xlu1 %224  ;;  %v228_v53 = vpop.xlane.xlu0 %227 }
 0x137   :  { %v315_v17 = vmul.f32 %v1720_v6, %v292_v7  ;;  %1351 = vrsqrt.f32 %v267_v8  ;;  %v253_v18 = vmul.f32 0.03125, %v225_v52  ;;  %v254_v19 = vmul.f32 0.03125, %v228_v53 }
 0x138   :  { %v1340_v22 = vpop.eup %1339  ;;  %1353 = vrsqrt.f32 %v268_v9 }
 0x139   :  { %v1342_v23 = vpop.eup %1341  ;;  %v338_v25 = vadd.f32 %v1726_v10, %v315_v17  ;;  %v293_v12 = vmul.f32 %v1340_v22, %v1626_v24  ;;  %v269_v57 = vadd.f32 1e-05, %v253_v18  ;;  %v270_v58 = vadd.f32 1e-05, %v254_v19 }
 0x13a   :  { %v294_v29 = vmul.f32 %v1342_v23, %v1619_v15  ;;  %v231_v32 = vpop.xlane.xlu1 %230  ;;  %v234_v33 = vpop.xlane.xlu0 %233 }
 0x13b   :  { %v1169_v34 = vpack.c.bf16 %v338_v25, %v338_v25  ;;  %v316_v60 = vmul.f32 %v1720_v6, %v293_v12  ;;  %1355 = vrsqrt.f32 %v269_v57  ;;  %v255_v61 = vmul.f32 0.03125, %v231_v32 }
 0x13c   :  { %v1344_v35 = vpop.eup %1343  ;;  %v317_v36 = vmul.f32 %v1720_v6, %v294_v29  ;;  %1357 = vrsqrt.f32 %v270_v58  ;;  %v256_v37 = vmul.f32 0.03125, %v234_v33 }
 0x13d   :  { %v1346_v38 = vpop.eup %1345  ;;  %435 = vst.msk [vmem:[#allocation3] sm:$0xf] %vm434_vm1, %v1169_v34  ;;  %v339_v24 = vadd.f32 %v1726_v10, %v316_v60  ;;  %v295_v39 = vmul.f32 %v1344_v35, %v1630_v13  ;;  %v271_v15 = vadd.f32 1e-05, %v255_v61 }
 0x13e   :  { %v340_v40 = vadd.f32 %v1726_v10, %v317_v36  ;;  %v296_v41 = vmul.f32 %v1346_v38, %v1638_v14  ;;  %v272_v42 = vadd.f32 1e-05, %v256_v37  ;;  %v237_v26 = vpop.xlane.xlu1 %236  ;;  %v240_v27 = vpop.xlane.xlu0 %239 }
 0x13f   :  { %v1170_v45 = vpack.c.bf16 %v339_v24, %v339_v24  ;;  %v318_v48 = vmul.f32 %v1720_v6, %v295_v39  ;;  %1359 = vrsqrt.f32 %v271_v15  ;;  %v257_v49 = vmul.f32 0.03125, %v237_v26 }
 0x140   :  { %v1348_v50 = vpop.eup %1347  ;;  %v1171_v51 = vpack.c.bf16 %v340_v40, %v340_v40  ;;  %v319_v54 = vmul.f32 %v1720_v6, %v296_v41  ;;  %1361 = vrsqrt.f32 %v272_v42  ;;  %v258_v30 = vmul.f32 0.03125, %v240_v27 }
 0x141   :  { %v1350_v13 = vpop.eup %1349  ;;  %436 = vst.msk [vmem:[#allocation3 + $0x4] sm:$0xf] %vm434_vm1, %v1170_v45  ;;  %v341_v31 = vadd.f32 %v1726_v10, %v318_v48  ;;  %v297_v14 = vmul.f32 %v1348_v50, %v1642_v21  ;;  %v273_v59 = vadd.f32 1e-05, %v257_v49 }
 0x142   :  { %437 = vst.msk [vmem:[#allocation3 + $0x8] sm:$0xf] %vm434_vm1, %v1171_v51  ;;  %v342_v62 = vadd.f32 %v1726_v10, %v319_v54  ;;  %v298_v63 = vmul.f32 %v1350_v13, %v1650_v43  ;;  %v274_v0 = vadd.f32 1e-05, %v258_v30  ;;  %v243_v1 = vpop.xlane.xlu1 %242 }
 0x143   :  { %v1172_v2 = vpack.c.bf16 %v341_v31, %v341_v31  ;;  %v320_v46 = vmul.f32 %v1720_v6, %v297_v14  ;;  %1363 = vrsqrt.f32 %v273_v59  ;;  %v259_v47 = vmul.f32 0.03125, %v243_v1 }
 0x144   :  { %v1352_v5 = vpop.eup %1351  ;;  %v1173_v7 = vpack.c.bf16 %v342_v62, %v342_v62  ;;  %v321_v8 = vmul.f32 %v1720_v6, %v298_v63  ;;  %1365 = vrsqrt.f32 %v274_v0 }
 0x145   :  { %v1354_v21 = vpop.eup %1353  ;;  %438 = vst.msk [vmem:[#allocation3 + $0xc] sm:$0xf] %vm434_vm1, %v1172_v2  ;;  %v343_v9 = vadd.f32 %v1726_v10, %v320_v46  ;;  %v299_v52 = vmul.f32 %v1352_v5, %v1654_v44  ;;  %v275_v43 = vadd.f32 1e-05, %v259_v47  ;;  %v1330_v2 = vld [vmem:[%s2074_s6 + $0x30] sm:$0xff]   ;;  %v1331_v46 = vld [vmem:[%s2074_s6 + $0x28] sm:$0xff]  }
 0x146   :  { %439 = vst.msk [vmem:[#allocation3 + $0x10] sm:$0xf] %vm434_vm1, %v1173_v7  ;;  %v344_v53 = vadd.f32 %v1726_v10, %v321_v8  ;;  %v300_v17 = vmul.f32 %v1354_v21, %v1662_v55  ;;  %v1332_v47 = vld [vmem:[%s2074_s6 + $0x20] sm:$0xff]   ;;  %v1333_v5 = vld [vmem:[%s2074_s6 + $0x18] sm:$0xff]   ;;  %v1334_v7 = vld [vmem:[%s2074_s6 + $0x10] sm:$0xff]  }
 0x147   :  { %v1174_v18 = vpack.c.bf16 %v343_v9, %v343_v9  ;;  %v322_v19 = vmul.f32 %v1720_v6, %v299_v52  ;;  %1367 = vrsqrt.f32 %v275_v43  ;;  %v1335_v8 = vld [vmem:[%s2074_s6 + $0x8] sm:$0xff]   ;;  %v1336_v21 = vld [vmem:[%s2074_s6] sm:$0xff]   ;;  %v1401_v9 = vmov 0.0  }
 0x148   :  { %v1356_v22 = vpop.eup %1355  ;;  %v1175_v23 = vpack.c.bf16 %v344_v53, %v344_v53  ;;  %v323_v25 = vmul.f32 %v1720_v6, %v300_v17  ;;  %v1321_v12 = vld [vmem:[#allocation3] sm:$0xff]   ;;  %453 = vst.msk [vmem:[#allocation4 + $0x10] sm:$0xff] %vm98_vm0, %v1401_v9  ;;  %451 = vst.msk [vmem:[#allocation4] sm:$0xff] %vm98_vm0, %v1401_v9 }
 0x149   :  { %v1358_v57 = vpop.eup %1357  ;;  %440 = vst.msk [vmem:[#allocation3 + $0x14] sm:$0xf] %vm434_vm1, %v1174_v18  ;;  %v345_v44 = vadd.f32 %v1726_v10, %v322_v19  ;;  %v301_v58 = vmul.f32 %v1356_v22, %v1666_v56  ;;  %1254 = vmatprep.mubr.msk.bf16.mxu0 %vm98_vm0, %v1321_v12  ;;  %v1842_v52 = vld [vmem:[%s2075_s5] ss:$0 sm:$0xff] }
 0x14a   :  { %441 = vst.msk [vmem:[#allocation3 + $0x18] sm:$0xf] %vm434_vm1, %v1175_v23  ;;  %v346_v55 = vadd.f32 %v1726_v10, %v323_v25  ;;  %v302_v29 = vmul.f32 %v1358_v57, %v1674_v3 }
 0x14b   :  { %v1176_v32 = vpack.c.bf16 %v345_v44, %v345_v44  ;;  %v324_v33 = vmul.f32 %v1720_v6, %v301_v58  ;;  %452 = vst.msk [vmem:[#allocation4 + $0x8] sm:$0xff] %vm98_vm0, %v1401_v9  ;;  %454 = vst.msk [vmem:[#allocation4 + $0x18] sm:$0xff] %vm98_vm0, %v1401_v9 }
 0x14c   :  { %v1360_v34 = vpop.eup %1359  ;;  %v1177_v60 = vpack.c.bf16 %v346_v55, %v346_v55  ;;  %v325_v61 = vmul.f32 %v1720_v6, %v302_v29  ;;  %v1322_v35 = vld [vmem:[#allocation3 + $0x8] sm:$0xff]   ;;  %455 = vst.msk [vmem:[#allocation4 + $0x20] sm:$0xff] %vm98_vm0, %v1401_v9  ;;  %456 = vst.msk [vmem:[#allocation4 + $0x28] sm:$0xff] %vm98_vm0, %v1401_v9 }
 0x14d   :  { %v1362_v36 = vpop.eup %1361  ;;  %442 = vst.msk [vmem:[#allocation3 + $0x1c] sm:$0xf] %vm434_vm1, %v1176_v32  ;;  %v347_v56 = vadd.f32 %v1726_v10, %v324_v33  ;;  %v303_v37 = vmul.f32 %v1360_v34, %v1678_v4  ;;  %1255 = vmatmul.mubr.msk.bf16.vlgmr.msra.gmra.mxu0 %vm98_vm0, %v1322_v35 }
 0x14e   :  { %443 = vst.msk [vmem:[#allocation3 + $0x20] sm:$0xf] %vm434_vm1, %v1177_v60  ;;  %v348_v3 = vadd.f32 %v1726_v10, %v325_v61  ;;  %v304_v38 = vmul.f32 %v1362_v36, %v1686_v11 }
 0x14f   :  { %v1178_v24 = vpack.c.bf16 %v347_v56, %v347_v56  ;;  %v326_v39 = vmul.f32 %v1720_v6, %v303_v37  ;;  %457 = vst.msk [vmem:[#allocation4 + $0x30] sm:$0xff] %vm98_vm0, %v1401_v9  ;;  %458 = vst.msk [vmem:[#allocation4 + $0x38] sm:$0xff] %vm98_vm0, %v1401_v9 }
 0x150   :  { %v1364_v15 = vpop.eup %1363  ;;  %v1179_v40 = vpack.c.bf16 %v348_v3, %v348_v3  ;;  %v327_v41 = vmul.f32 %v1720_v6, %v304_v38  ;;  %v1323_v42 = vld [vmem:[#allocation3 + $0x10] sm:$0xff]   ;;  %459 = vst.msk [vmem:[#allocation4 + $0x40] sm:$0xff] %vm98_vm0, %v1401_v9  ;;  %460 = vst.msk [vmem:[#allocation4 + $0x48] sm:$0xff] %vm98_vm0, %v1401_v9 }
 0x151   :  { %v1366_v26 = vpop.eup %1365  ;;  %444 = vst.msk [vmem:[#allocation3 + $0x24] sm:$0xf] %vm434_vm1, %v1178_v24  ;;  %v349_v4 = vadd.f32 %v1726_v10, %v326_v39  ;;  %v305_v27 = vmul.f32 %v1364_v15, %v1690_v16  ;;  %1258 = vmatprep.mubr.msk.bf16.mxu0 %vm98_vm0, %v1323_v42 }
 0x152   :  { %445 = vst.msk [vmem:[#allocation3 + $0x28] sm:$0xf] %vm434_vm1, %v1179_v40  ;;  %v350_v11 = vadd.f32 %v1726_v10, %v327_v41  ;;  %v306_v45 = vmul.f32 %v1366_v26, %v1698_v20 }
 0x153   :  { %v1180_v48 = vpack.c.bf16 %v349_v4, %v349_v4  ;;  %v328_v49 = vmul.f32 %v1720_v6, %v305_v27  ;;  %461 = vst.msk [vmem:[#allocation4 + $0x50] sm:$0xff] %vm98_vm0, %v1401_v9  ;;  %462 = vst.msk [vmem:[#allocation4 + $0x58] sm:$0xff] %vm98_vm0, %v1401_v9 }
 0x154   :  { %v1368_v50 = vpop.eup %1367  ;;  %v1181_v51 = vpack.c.bf16 %v350_v11, %v350_v11  ;;  %v329_v54 = vmul.f32 %v1720_v6, %v306_v45  ;;  %v1324_v30 = vld [vmem:[#allocation3 + $0x18] sm:$0xff]   ;;  %463 = vst.msk [vmem:[#allocation4 + $0x60] sm:$0xff] %vm98_vm0, %v1401_v9  ;;  %464 = vst.msk [vmem:[#allocation4 + $0x68] sm:$0xff] %vm98_vm0, %v1401_v9 }
 0x155   :  { %446 = vst.msk [vmem:[#allocation3 + $0x2c] sm:$0xf] %vm434_vm1, %v1180_v48  ;;  %v351_v16 = vadd.f32 %v1726_v10, %v328_v49  ;;  %v307_v13 = vmul.f32 %v1368_v50, %v1702_v28  ;;  %1259 = vmatmul.mubr.msk.bf16.gmra.mxu0 %vm98_vm0, %v1324_v30 }
 0x156   :  { %447 = vst.msk [vmem:[#allocation3 + $0x30] sm:$0xf] %vm434_vm1, %v1181_v51  ;;  %v352_v20 = vadd.f32 %v1726_v10, %v329_v54 }
 0x157   :  { %v1182_v31 = vpack.c.bf16 %v351_v16, %v351_v16  ;;  %v330_v14 = vmul.f32 %v1720_v6, %v307_v13  ;;  %465 = vst.msk [vmem:[#allocation4 + $0x70] sm:$0xff] %vm98_vm0, %v1401_v9  ;;  %466 = vst.msk [vmem:[#allocation4 + $0x78] sm:$0xff] %vm98_vm0, %v1401_v9 }
 0x158   :  { %v1183_v59 = vpack.c.bf16 %v352_v20, %v352_v20  ;;  %v1325_v62 = vld [vmem:[#allocation3 + $0x20] sm:$0xff]  }
 0x159   :  { %448 = vst.msk [vmem:[#allocation3 + $0x34] sm:$0xf] %vm434_vm1, %v1182_v31  ;;  %v353_v63 = vadd.f32 %v1726_v10, %v330_v14  ;;  %1262 = vmatprep.mubr.msk.bf16.mxu0 %vm98_vm0, %v1325_v62  ;;  %v1329_v10 = vld [vmem:[%s2074_s6 + $0x38] sm:$0xff]  }
 0x15a   :  { %449 = vst.msk [vmem:[#allocation3 + $0x38] sm:$0xf] %vm434_vm1, %v1183_v59  ;;  %1270 = vmatprep.subr.bf16.mxu0 %v1329_v10  ;;  %1302 = vmatprep.subr.bf16.mxu1 %v1329_v10 }
 0x15b   :  { %v1184_v28 = vpack.c.bf16 %v353_v63, %v353_v63  ;;  %1271 = vmatpush3.bf16.msra.mxu0 %v1329_v10  ;;  %1310 = vmatpush3.bf16.msra.mxu1 %v1329_v10 }
 0x15c   :  { %v1326_v0 = vld [vmem:[#allocation3 + $0x28] sm:$0xff]   ;;  %1272 = vmatprep.subr.bf16.mxu0 %v1330_v2  ;;  %1303 = vmatprep.subr.bf16.mxu1 %v1330_v2 }
 0x15d   :  { %450 = vst.msk [vmem:[#allocation3 + $0x3c] sm:$0xf] %vm434_vm1, %v1184_v28  ;;  %1263 = vmatmul.mubr.msk.bf16.gmra.mxu0 %vm98_vm0, %v1326_v0 }
 0x15f   :  { %1273 = vmatpush3.bf16.msra.mxu0 %v1330_v2  ;;  %1311 = vmatpush3.bf16.msra.mxu1 %v1330_v2 }
 0x160   :  { %v1327_v1 = vld [vmem:[#allocation3 + $0x30] sm:$0xff]   ;;  %1274 = vmatprep.subr.bf16.mxu0 %v1331_v46  ;;  %1304 = vmatprep.subr.bf16.mxu1 %v1331_v46 }
 0x161   :  { %1266 = vmatprep.mubr.msk.bf16.mxu0 %vm98_vm0, %v1327_v1 }
 0x163   :  { %1275 = vmatpush3.bf16.msra.mxu0 %v1331_v46  ;;  %1312 = vmatpush3.bf16.msra.mxu1 %v1331_v46 }
 0x164   :  { %v1328_v6 = vld [vmem:[#allocation3 + $0x38] sm:$0xff]   ;;  %1276 = vmatprep.subr.bf16.mxu0 %v1332_v47  ;;  %1305 = vmatprep.subr.bf16.mxu1 %v1332_v47 }
 0x165   :  { %1267 = vmatmul.mubr.msk.bf16.gmra.mxu0 %vm98_vm0, %v1328_v6 }
 0x167   :  { %1277 = vmatpush3.bf16.msra.mxu0 %v1332_v47  ;;  %1313 = vmatpush3.bf16.msra.mxu1 %v1332_v47 }
 0x168   :  { %1278 = vmatprep.subr.bf16.mxu0 %v1333_v5  ;;  %1306 = vmatprep.subr.bf16.mxu1 %v1333_v5 }
 0x16b   :  { %1279 = vmatpush3.bf16.msra.mxu0 %v1333_v5  ;;  %1314 = vmatpush3.bf16.msra.mxu1 %v1333_v5 }
 0x16c   :  { %1280 = vmatprep.subr.bf16.mxu0 %v1334_v7  ;;  %1307 = vmatprep.subr.bf16.mxu1 %v1334_v7 }
 0x16f   :  { %1281 = vmatpush3.bf16.msra.mxu0 %v1334_v7  ;;  %1315 = vmatpush3.bf16.msra.mxu1 %v1334_v7 }
 0x170   :  { %1282 = vmatprep.subr.bf16.mxu0 %v1335_v8  ;;  %1308 = vmatprep.subr.bf16.mxu1 %v1335_v8 }
 0x173   :  { %1283 = vmatpush3.bf16.msra.mxu0 %v1335_v8  ;;  %1316 = vmatpush3.bf16.msra.mxu1 %v1335_v8 }
 0x174   :  { %1284 = vmatprep.subr.bf16.mxu0 %v1336_v21  ;;  %1309 = vmatprep.subr.bf16.mxu1 %v1336_v21 }
 0x177   :  { %1285 = vmatpush3.bf16.msra.mxu0 %v1336_v21  ;;  %1317 = vmatpush3.bf16.msra.mxu1 %v1336_v21 }
 0x20d   :  { %v1256_v43 = vpop.f32.mrf.mxu0 }
 0x20e   :  { %v614_v53 = vadd.f32 %v1256_v43, %v1842_v52 }
 0x20f   :  { %v605_v17 = vpop.f32.mrf.mxu0 }
 0x210   :  { %v686_v18 = vmul.f32 %v614_v53, %v614_v53  ;;  %v1846_v19 = vadd.f32 %v1842_v52, %v605_v17  ;;  %v1900_v46 = vmul.f32 0.5, %v614_v53 }
 0x211   :  { %v1257_v22 = vpop.f32.mrf.mxu0 }
 0x212   :  { %v702_v23 = vmul.f32 %v686_v18, %v614_v53  ;;  %v684_v25 = vmul.f32 %v1846_v19, %v1846_v19  ;;  %v1851_v12 = vadd.f32 %v1257_v22, %v1842_v52 }
 0x213   :  { %v608_v57 = vpop.f32.mrf.mxu0 }
 0x214   :  { %v718_v44 = vmul.f32 0.044715, %v702_v23  ;;  %v700_v58 = vmul.f32 %v684_v25, %v1846_v19  ;;  %v687_v55 = vmul.f32 %v1851_v12, %v1851_v12  ;;  %v1857_v29 = vadd.f32 %v1842_v52, %v608_v57 }
 0x215   :  { %v1260_v32 = vpop.f32.mrf.mxu0 }
 0x216   :  { %v734_v33 = vadd.f32 %v718_v44, %v614_v53  ;;  %v716_v34 = vmul.f32 0.044715, %v700_v58  ;;  %v703_v60 = vmul.f32 %v687_v55, %v1851_v12  ;;  %v1861_v61 = vadd.f32 %v1260_v32, %v1842_v52 }
 0x217   :  { %v685_v35 = vmul.f32 %v1857_v29, %v1857_v29  ;;  %v621_v36 = vpop.f32.mrf.mxu0  ;;  %v668_v44 = vmul.f32 0.5, %v1846_v19 }
 0x218   :  { %v750_v56 = vmul.f32 0.7978846, %v734_v33  ;;  %v732_v37 = vadd.f32 %v716_v34, %v1846_v19  ;;  %v719_v3 = vmul.f32 0.044715, %v703_v60  ;;  %v690_v38 = vmul.f32 %v1861_v61, %v1861_v61 }
 0x219   :  { %v701_v24 = vmul.f32 %v685_v35, %v1857_v29  ;;  %v1870_v39 = vadd.f32 %v1842_v52, %v621_v36  ;;  %v1261_v15 = vpop.f32.mrf.mxu0  ;;  %v671_v60 = vmul.f32 0.5, %v1851_v12 }
 0x21a   :  { %1369 = vtanh.f32 %v750_v56  ;;  %v748_v40 = vmul.f32 0.7978846, %v732_v37  ;;  %v735_v41 = vadd.f32 %v719_v3, %v1851_v12  ;;  %v706_v42 = vmul.f32 %v690_v38, %v1861_v61 }
 0x21b   :  { %v717_v26 = vmul.f32 0.044715, %v701_v24  ;;  %v688_v4 = vmul.f32 %v1870_v39, %v1870_v39  ;;  %v1877_v27 = vadd.f32 %v1261_v15, %v1842_v52  ;;  %v624_v11 = vpop.f32.mrf.mxu0  ;;  %v669_v38 = vmul.f32 0.5, %v1857_v29 }
 0x21c   :  { %v751_v45 = vmul.f32 0.7978846, %v735_v41  ;;  %v722_v48 = vmul.f32 0.044715, %v706_v42  ;;  %v1880_v49 = vadd.f32 %v1842_v52, %v624_v11  ;;  %1371 = vtanh.f32 %v748_v40 }
 0x21d   :  { %v733_v50 = vadd.f32 %v717_v26, %v1857_v29  ;;  %v704_v51 = vmul.f32 %v688_v4, %v1870_v39  ;;  %v691_v54 = vmul.f32 %v1877_v27, %v1877_v27  ;;  %v1264_v30 = vpop.f32.mrf.mxu0 }
 0x21e   :  { %1373 = vtanh.f32 %v751_v45  ;;  %v738_v16 = vadd.f32 %v722_v48, %v1861_v61  ;;  %v689_v13 = vmul.f32 %v1880_v49, %v1880_v49  ;;  %v1890_v20 = vadd.f32 %v1264_v30, %v1842_v52 }
 0x21f   :  { %v749_v31 = vmul.f32 0.7978846, %v733_v50  ;;  %v720_v14 = vmul.f32 0.044715, %v704_v51  ;;  %v707_v59 = vmul.f32 %v691_v54, %v1877_v27  ;;  %v637_v62 = vpop.f32.mrf.mxu0 }
 0x220   :  { %v754_v63 = vmul.f32 0.7978846, %v738_v16  ;;  %v705_v28 = vmul.f32 %v689_v13, %v1880_v49  ;;  %v694_v0 = vmul.f32 %v1890_v20, %v1890_v20  ;;  %v1897_v1 = vadd.f32 %v1842_v52, %v637_v62 }
 0x221   :  { %1375 = vtanh.f32 %v749_v31  ;;  %v723_v6 = vmul.f32 0.044715, %v707_v59  ;;  %v1265_v10 = vpop.f32.mrf.mxu0  ;;  %v736_v2 = vadd.f32 %v720_v14, %v1870_v39 }
 0x222   :  { %v721_v47 = vmul.f32 0.044715, %v705_v28  ;;  %v710_v5 = vmul.f32 %v694_v0, %v1890_v20  ;;  %v692_v7 = vmul.f32 %v1897_v1, %v1897_v1  ;;  %1377 = vtanh.f32 %v754_v63 }
 0x223   :  { %v739_v8 = vadd.f32 %v723_v6, %v1877_v27  ;;  %v1907_v21 = vadd.f32 %v1265_v10, %v1842_v52  ;;  %v640_v9 = vpop.f32.mrf.mxu0  ;;  %v752_v43 = vmul.f32 0.7978846, %v736_v2 }
 0x224   :  { %v726_v17 = vmul.f32 0.044715, %v710_v5  ;;  %v708_v18 = vmul.f32 %v692_v7, %v1897_v1  ;;  %v1911_v53 = vadd.f32 %v1842_v52, %v640_v9  ;;  %v737_v22 = vadd.f32 %v721_v47, %v1880_v49 }
 0x225   :  { %v755_v23 = vmul.f32 0.7978846, %v739_v8  ;;  %v695_v25 = vmul.f32 %v1907_v21, %v1907_v21  ;;  %v1268_v57 = vpop.f32.mrf.mxu0  ;;  %1379 = vtanh.f32 %v752_v43 }
 0x226   :  { %v742_v58 = vadd.f32 %v726_v17, %v1890_v20  ;;  %v724_v55 = vmul.f32 0.044715, %v708_v18  ;;  %v693_v32 = vmul.f32 %v1911_v53, %v1911_v53  ;;  %v1921_v33 = vadd.f32 %v1268_v57, %v1842_v52 }
 0x227   :  { %v1370_v34 = vpop.eup %1369  ;;  %1381 = vtanh.f32 %v755_v23  ;;  %v711_v35 = vmul.f32 %v695_v25, %v1907_v21  ;;  %v653_v36 = vpop.f32.mrf.mxu0  ;;  %v753_v56 = vmul.f32 0.7978846, %v737_v22 }
 0x228   :  { %v782_v37 = vadd.f32 1.0, %v1370_v34  ;;  %v740_v19 = vadd.f32 %v724_v55, %v1897_v1  ;;  %v709_v3 = vmul.f32 %v693_v32, %v1911_v53  ;;  %v698_v15 = vmul.f32 %v1921_v33, %v1921_v33 }
 0x229   :  { %v727_v24 = vmul.f32 0.044715, %v711_v35  ;;  %v1931_v40 = vadd.f32 %v1842_v52, %v653_v36  ;;  %v1269_v12 = vpop.f32.mrf.mxu0  ;;  %1383 = vtanh.f32 %v753_v56  ;;  %v1372_v41 = vpop.eup %1371  ;;  %v758_v42 = vmul.f32 0.7978846, %v742_v58 }
 0x22a   :  { %v756_v26 = vmul.f32 0.7978846, %v740_v19  ;;  %v725_v4 = vmul.f32 0.044715, %v709_v3  ;;  %v714_v48 = vmul.f32 %v698_v15, %v1921_v33  ;;  %v1938_v50 = vadd.f32 %v1269_v12, %v1842_v52 }
 0x22b   :  { %v1374_v11 = vpop.eup %1373  ;;  %v743_v45 = vadd.f32 %v727_v24, %v1907_v21  ;;  %v696_v29 = vmul.f32 %v1931_v40, %v1931_v40  ;;  %v656_v51 = vpop.f32.mrf.mxu0  ;;  %v780_v0 = vadd.f32 1.0, %v1372_v41  ;;  %v798_v8 = vmul.f32 %v782_v37, %v1900_v46 }
 0x22c   :  { %v783_v54 = vadd.f32 1.0, %v1374_v11  ;;  %1385 = vtanh.f32 %v756_v26  ;;  %v741_v30 = vadd.f32 %v725_v4, %v1911_v53  ;;  %v1942_v16 = vadd.f32 %v1842_v52, %v656_v51 }
 0x22d   :  { %v759_v13 = vmul.f32 0.7978846, %v743_v45  ;;  %v730_v31 = vmul.f32 0.044715, %v714_v48  ;;  %v712_v14 = vmul.f32 %v696_v29, %v1931_v40  ;;  %v699_v59 = vmul.f32 %v1938_v50, %v1938_v50 }
 0x22e   :  { %v1376_v62 = vpop.eup %1375  ;;  %1387 = vtanh.f32 %v758_v42  ;;  %v757_v63 = vmul.f32 0.7978846, %v741_v30  ;;  %v697_v28 = vmul.f32 %v1942_v16, %v1942_v16  ;;  %v799_v47 = vmul.f32 %v783_v54, %v671_v60 }
 0x22f   :  { %1389 = vtanh.f32 %v759_v13  ;;  %v746_v6 = vadd.f32 %v730_v31, %v1921_v33  ;;  %v728_v10 = vmul.f32 0.044715, %v712_v14  ;;  %v715_v52 = vmul.f32 %v699_v59, %v1938_v50  ;;  %v1378_v2 = vpop.eup %1377 }
 0x230   :  { %1391 = vtanh.f32 %v757_v63  ;;  %v713_v5 = vmul.f32 %v697_v28, %v1942_v16  ;;  %v781_v7 = vadd.f32 1.0, %v1376_v62  ;;  %v796_v23 = vmul.f32 %v780_v0, %v668_v44 }
 0x231   :  { %v744_v9 = vadd.f32 %v728_v10, %v1931_v40  ;;  %v731_v43 = vmul.f32 0.044715, %v715_v52  ;;  %v762_v18 = vmul.f32 0.7978846, %v746_v6  ;;  %v829_v60 = vpack.c.bf16 %v799_v47, %v798_v8 }
 0x232   :  { %v1380_v17 = vpop.eup %1379  ;;  %v729_v22 = vmul.f32 0.044715, %v713_v5  ;;  %v797_v25 = vmul.f32 %v781_v7, %v669_v38  ;;  %v675_v19 = vmul.f32 0.5, %v1877_v27  ;;  %v786_v44 = vadd.f32 1.0, %v1378_v2 }
 0x233   :  { %v760_v57 = vmul.f32 0.7978846, %v744_v9  ;;  %v747_v58 = vadd.f32 %v731_v43, %v1938_v50  ;;  %v784_v36 = vadd.f32 1.0, %v1380_v17  ;;  %v672_v3 = vmul.f32 0.5, %v1870_v39 }
 0x234   :  { %v1382_v55 = vpop.eup %1381  ;;  %v745_v32 = vadd.f32 %v729_v22, %v1942_v16  ;;  %v828_v34 = vpack.c.bf16 %v797_v25, %v796_v23  ;;  %v673_v38 = vmul.f32 0.5, %v1880_v49  ;;  %v674_v15 = vmul.f32 0.5, %v1861_v61  ;;  %v814_v25 = vld [vmem:[#allocation4 + $0x10] sm:$0xff] }
 0x235   :  { %1393 = vtanh.f32 %v760_v57  ;;  %v763_v35 = vmul.f32 0.7978846, %v747_v58  ;;  %v787_v46 = vadd.f32 1.0, %v1382_v55  ;;  %v800_v42 = vmul.f32 %v784_v36, %v672_v3  ;;  %v812_v57 = vld [vmem:[#allocation4] sm:$0xff]  ;;  %v819_v3 = vld [vmem:[#allocation4 + $0x38] sm:$0xff] }
 0x236   :  { %v1384_v56 = vpop.eup %1383  ;;  %1395 = vtanh.f32 %v762_v18  ;;  %v761_v37 = vmul.f32 0.7978846, %v745_v32  ;;  %1286 = vmatprep.mubr.bf16.mxu0 %v828_v34  ;;  %v802_v4 = vmul.f32 %v786_v44, %v674_v15  ;;  %v676_v39 = vmul.f32 0.5, %v1897_v1  ;;  %v813_v34 = vld [vmem:[#allocation4 + $0x8] sm:$0xff] }
 0x237   :  { %1397 = vtanh.f32 %v763_v35  ;;  %1287 = vmatmul.mubr.bf16.vlgmr.msra.gmra.mxu0 %v829_v60  ;;  %v785_v24 = vadd.f32 1.0, %v1384_v56  ;;  %v803_v12 = vmul.f32 %v787_v46, %v675_v19  ;;  %v677_v49 = vmul.f32 0.5, %v1911_v53  ;;  %v818_v60 = vld [vmem:[#allocation4 + $0x30] sm:$0xff]  ;;  %v816_v56 = vld [vmem:[#allocation4 + $0x20] sm:$0xff] }
 0x238   :  { %1399 = vtanh.f32 %v761_v37  ;;  %v679_v61 = vmul.f32 0.5, %v1907_v21  ;;  %v678_v59 = vmul.f32 0.5, %v1890_v20  ;;  %v680_v53 = vmul.f32 0.5, %v1931_v40  ;;  %v1974_v37 = vld [vmem:[%s2076_s7] ss:$0 sm:$0xff] }
 0x239   :  { %v1386_v41 = vpop.eup %1385  ;;  %v801_v26 = vmul.f32 %v785_v24, %v673_v38  ;;  %v831_v27 = vpack.c.bf16 %v803_v12, %v802_v4  ;;  %v681_v21 = vmul.f32 0.5, %v1942_v16  ;;  %v683_v7 = vmul.f32 0.5, %v1938_v50  ;;  %v815_v16 = vld [vmem:[#allocation4 + $0x18] sm:$0xff]  ;;  %v1073_v38 = vld [vmem:[#allocation2 + $0x10] sm:$0xff] }
 0x23a   :  { %v788_v29 = vadd.f32 1.0, %v1386_v41  ;;  %v682_v43 = vmul.f32 0.5, %v1921_v33 }
 0x23b   :  { %v1388_v11 = vpop.eup %1387  ;;  %v830_v45 = vpack.c.bf16 %v801_v26, %v800_v42  ;;  %v817_v42 = vld [vmem:[#allocation4 + $0x28] sm:$0xff]  ;;  %v1071_v26 = vld [vmem:[#allocation2] sm:$0xff] }
 0x23c   :  { %v1390_v48 = vpop.eup %1389  ;;  %v790_v13 = vadd.f32 1.0, %v1388_v11  ;;  %v804_v31 = vmul.f32 %v788_v29, %v676_v39  ;;  %v822_v29 = vld [vmem:[#allocation4 + $0x50] sm:$0xff]  ;;  %v1074_v39 = vld [vmem:[#allocation2 + $0x18] sm:$0xff] }
 0x23d   :  { %v1392_v51 = vpop.eup %1391  ;;  %1290 = vmatprep.mubr.bf16.mxu1 %v830_v45  ;;  %v791_v54 = vadd.f32 1.0, %v1390_v48 }
 0x23e   :  { %1291 = vmatmul.mubr.bf16.vlgmr.msra.gmra.mxu1 %v831_v27  ;;  %v789_v30 = vadd.f32 1.0, %v1392_v51  ;;  %v806_v0 = vmul.f32 %v790_v13, %v678_v59  ;;  %v820_v13 = vld [vmem:[#allocation4 + $0x40] sm:$0xff] }
 0x23f   :  { %v807_v62 = vmul.f32 %v791_v54, %v679_v61 }
 0x240   :  { %v805_v14 = vmul.f32 %v789_v30, %v677_v49 }
 0x241   :  { %v833_v1 = vpack.c.bf16 %v807_v62, %v806_v0  ;;  %v1077_v0 = vld [vmem:[#allocation2 + $0x30] sm:$0xff] }
 0x242   :  { %v1394_v63 = vpop.eup %1393  ;;  %v832_v28 = vpack.c.bf16 %v805_v14, %v804_v31  ;;  %v1072_v14 = vld [vmem:[#allocation2 + $0x8] sm:$0xff] }
 0x243   :  { %v1396_v6 = vpop.eup %1395  ;;  %v792_v52 = vadd.f32 1.0, %v1394_v63 }
 0x244   :  { %v1398_v10 = vpop.eup %1397  ;;  %1294 = vmatprep.mubr.bf16.mxu1 %v832_v28  ;;  %v794_v20 = vadd.f32 1.0, %v1396_v6 }
 0x245   :  { %v1400_v2 = vpop.eup %1399  ;;  %v795_v47 = vadd.f32 1.0, %v1398_v10  ;;  %v808_v8 = vmul.f32 %v792_v52, %v680_v53  ;;  %v823_v10 = vld [vmem:[#allocation4 + $0x58] sm:$0xff] }
 0x246   :  { %1295 = vmatmul.mubr.bf16.gmra.mxu1 %v833_v1  ;;  %v793_v5 = vadd.f32 1.0, %v1400_v2  ;;  %v810_v22 = vmul.f32 %v794_v20, %v682_v43  ;;  %v1078_v43 = vld [vmem:[#allocation2 + $0x38] sm:$0xff] }
 0x247   :  { %v811_v17 = vmul.f32 %v795_v47, %v683_v7  ;;  %v1075_v47 = vld [vmem:[#allocation2 + $0x20] sm:$0xff] }
 0x248   :  { %v809_v9 = vmul.f32 %v793_v5, %v681_v21  ;;  %v821_v5 = vld [vmem:[#allocation4 + $0x48] sm:$0xff] }
 0x249   :  { %v835_v23 = vpack.c.bf16 %v811_v17, %v810_v22 }
 0x24a   :  { %v834_v18 = vpack.c.bf16 %v809_v9, %v808_v8 }
 0x24c   :  { %1298 = vmatprep.mubr.bf16.mxu1 %v834_v18  ;;  %v826_v18 = vld [vmem:[#allocation4 + $0x70] sm:$0xff] }
 0x24e   :  { %1299 = vmatmul.mubr.bf16.gmra.mxu1 %v835_v23 }
 0x2f7   :  { %v1288_v40 = vpop.f32.mrf.mxu0 }
 0x2f8   :  { %v999_v58 = vadd.f32 %v1288_v40, %v814_v25 }
 0x2f9   :  { %v934_v55 = vpop.f32.mrf.mxu0 }
 0x2fa   :  { %1015 = vst.msk [vmem:[#allocation4 + $0x10] sm:$0xff] %vm98_vm0, %v999_v58  ;;  %v997_v50 = vadd.f32 %v934_v55, %v812_v57  ;;  %v1076_v57 = vld [vmem:[#allocation2 + $0x28] sm:$0xff]  ;;  %v824_v55 = vld [vmem:[#allocation4 + $0x60] sm:$0xff] }
 0x2fb   :  { %v1289_v32 = vpop.f32.mrf.mxu0 }
 0x2fc   :  { %1013 = vst.msk [vmem:[#allocation4] sm:$0xff] %vm98_vm0, %v997_v50  ;;  %v1000_v33 = vadd.f32 %v1289_v32, %v815_v16 }
 0x2fd   :  { %v937_v35 = vpop.f32.mrf.mxu0 }
 0x2fe   :  { %1016 = vst.msk [vmem:[#allocation4 + $0x18] sm:$0xff] %vm98_vm0, %v1000_v33  ;;  %v998_v36 = vadd.f32 %v937_v35, %v813_v34  ;;  %v1292_v46 = vpop.f32.mrf.mxu1  ;;  %v1081_v33 = vld [vmem:[#allocation2 + $0x50] sm:$0xff]  ;;  %v827_v35 = vld [vmem:[#allocation4 + $0x78] sm:$0xff] }
 0x2ff   :  { %v1003_v19 = vadd.f32 %v1292_v46, %v818_v60 }
 0x300   :  { %1014 = vst.msk [vmem:[#allocation4 + $0x8] sm:$0xff] %vm98_vm0, %v998_v36  ;;  %v950_v44 = vpop.f32.mrf.mxu1 }
 0x301   :  { %v1034_v24 = vld [vmem:[#allocation4 + $0x10] sm:$0xff]  ;;  %1019 = vst.msk [vmem:[#allocation4 + $0x30] sm:$0xff] %vm98_vm0, %v1003_v19  ;;  %v1001_v15 = vadd.f32 %v950_v44, %v816_v56  ;;  %v1079_v44 = vld [vmem:[#allocation2 + $0x40] sm:$0xff] }
 0x302   :  { %v1057_v12 = vadd.f32 %v1974_v37, %v1034_v24  ;;  %v1293_v41 = vpop.f32.mrf.mxu1 }
 0x303   :  { %v1032_v4 = vld [vmem:[#allocation4] sm:$0xff]  ;;  %1017 = vst.msk [vmem:[#allocation4 + $0x20] sm:$0xff] %vm98_vm0, %v1001_v15  ;;  %v1004_v11 = vadd.f32 %v1293_v41, %v819_v3 }
 0x304   :  { %v1089_v45 = vadd.f32 %v1073_v38, %v1057_v12  ;;  %v1055_v48 = vadd.f32 %v1974_v37, %v1032_v4  ;;  %v953_v27 = vpop.f32.mrf.mxu1  ;;  %v825_v38 = vld [vmem:[#allocation4 + $0x68] sm:$0xff] }
 0x305   :  { %v1035_v51 = vld [vmem:[#allocation4 + $0x18] sm:$0xff]  ;;  %1020 = vst.msk [vmem:[#allocation4 + $0x38] sm:$0xff] %vm98_vm0, %v1004_v11  ;;  %v1002_v54 = vadd.f32 %v953_v27, %v817_v42  ;;  %v1080_v27 = vld [vmem:[#allocation2 + $0x48] sm:$0xff] }
 0x306   :  { %1105 = vst.msk [vmem:[%s2077_s8 + $0x10] sm:$0xff] %vm98_vm0, %v1089_v45  ;;  %v1087_v49 = vadd.f32 %v1071_v26, %v1055_v48  ;;  %v1058_v30 = vadd.f32 %v1974_v37, %v1035_v51  ;;  %v1296_v61 = vpop.f32.mrf.mxu1  ;;  %v1082_v42 = vld [vmem:[#allocation2 + $0x58] sm:$0xff] }
 0x307   :  { %v1033_v31 = vld [vmem:[#allocation4 + $0x8] sm:$0xff]  ;;  %1018 = vst.msk [vmem:[#allocation4 + $0x28] sm:$0xff] %vm98_vm0, %v1002_v54  ;;  %v1007_v59 = vadd.f32 %v1296_v61, %v822_v29  ;;  %v1085_v54 = vld [vmem:[#allocation2 + $0x70] sm:$0xff] }
 0x308   :  { %1103 = vst.msk [vmem:[%s2077_s8] sm:$0xff] %vm98_vm0, %v1087_v49  ;;  %v1090_v62 = vadd.f32 %v1074_v39, %v1058_v30  ;;  %v1056_v63 = vadd.f32 %v1974_v37, %v1033_v31  ;;  %v1038_v28 = vld [vmem:[#allocation4 + $0x30] sm:$0xff]  ;;  %v966_v6 = vpop.f32.mrf.mxu1 }
 0x309   :  { %v1061_v1 = vadd.f32 %v1974_v37, %v1038_v28  ;;  %1023 = vst.msk [vmem:[#allocation4 + $0x50] sm:$0xff] %vm98_vm0, %v1007_v59  ;;  %v1005_v52 = vadd.f32 %v966_v6, %v820_v13  ;;  %v1083_v13 = vld [vmem:[#allocation2 + $0x60] sm:$0xff]  ;;  %v1084_v6 = vld [vmem:[#allocation2 + $0x68] sm:$0xff] }
 0x30a   :  { %1106 = vst.msk [vmem:[%s2077_s8 + $0x18] sm:$0xff] %vm98_vm0, %v1090_v62  ;;  %v1088_v2 = vadd.f32 %v1072_v14, %v1056_v63  ;;  %v1036_v53 = vld [vmem:[#allocation4 + $0x20] sm:$0xff]  ;;  %v1297_v21 = vpop.f32.mrf.mxu1  ;;  %v1086_v62 = vld [vmem:[#allocation2 + $0x78] sm:$0xff] }
 0x30b   :  { %v1093_v7 = vadd.f32 %v1077_v0, %v1061_v1  ;;  %v1059_v20 = vadd.f32 %v1974_v37, %v1036_v53  ;;  %1021 = vst.msk [vmem:[#allocation4 + $0x40] sm:$0xff] %vm98_vm0, %v1005_v52  ;;  %v1008_v8 = vadd.f32 %v1297_v21, %v823_v10 }
 0x30c   :  { %1104 = vst.msk [vmem:[%s2077_s8 + $0x8] sm:$0xff] %vm98_vm0, %v1088_v2  ;;  %v1039_v9 = vld [vmem:[#allocation4 + $0x38] sm:$0xff]  ;;  %v969_v17 = vpop.f32.mrf.mxu1 }
 0x30d   :  { %1109 = vst.msk [vmem:[%s2077_s8 + $0x30] sm:$0xff] %vm98_vm0, %v1093_v7  ;;  %v1091_v22 = vadd.f32 %v1075_v47, %v1059_v20  ;;  %v1062_v23 = vadd.f32 %v1974_v37, %v1039_v9  ;;  %1024 = vst.msk [vmem:[#allocation4 + $0x58] sm:$0xff] %vm98_vm0, %v1008_v8  ;;  %v1006_v25 = vadd.f32 %v969_v17, %v821_v5 }
 0x30e   :  { %v1037_v40 = vld [vmem:[#allocation4 + $0x28] sm:$0xff]  ;;  %v1300_v58 = vpop.f32.mrf.mxu1 }
 0x30f   :  { %1107 = vst.msk [vmem:[%s2077_s8 + $0x20] sm:$0xff] %vm98_vm0, %v1091_v22  ;;  %v1094_v16 = vadd.f32 %v1078_v43, %v1062_v23  ;;  %v1060_v50 = vadd.f32 %v1974_v37, %v1037_v40  ;;  %1022 = vst.msk [vmem:[#allocation4 + $0x48] sm:$0xff] %vm98_vm0, %v1006_v25  ;;  %v1011_v32 = vadd.f32 %v1300_v58, %v826_v18 }
 0x310   :  { %v1042_v34 = vld [vmem:[#allocation4 + $0x50] sm:$0xff]  ;;  %v982_v60 = vpop.f32.mrf.mxu1 }
 0x311   :  { %1110 = vst.msk [vmem:[%s2077_s8 + $0x38] sm:$0xff] %vm98_vm0, %v1094_v16  ;;  %v1092_v36 = vadd.f32 %v1076_v57, %v1060_v50  ;;  %v1065_v46 = vadd.f32 %v1974_v37, %v1042_v34  ;;  %1027 = vst.msk [vmem:[#allocation4 + $0x70] sm:$0xff] %vm98_vm0, %v1011_v32  ;;  %v1009_v56 = vadd.f32 %v982_v60, %v824_v55 }
 0x312   :  { %v1040_v19 = vld [vmem:[#allocation4 + $0x40] sm:$0xff]  ;;  %v1301_v3 = vpop.f32.mrf.mxu1 }
 0x313   :  { %1108 = vst.msk [vmem:[%s2077_s8 + $0x28] sm:$0xff] %vm98_vm0, %v1092_v36  ;;  %v1097_v24 = vadd.f32 %v1081_v33, %v1065_v46  ;;  %v1063_v15 = vadd.f32 %v1974_v37, %v1040_v19  ;;  %1025 = vst.msk [vmem:[#allocation4 + $0x60] sm:$0xff] %vm98_vm0, %v1009_v56  ;;  %v1012_v12 = vadd.f32 %v1301_v3, %v827_v35 }
 0x314   :  { %v1043_v41 = vld [vmem:[#allocation4 + $0x58] sm:$0xff]  ;;  %v985_v26 = vpop.f32.mrf.mxu1 }
 0x315   :  { %1113 = vst.msk [vmem:[%s2077_s8 + $0x50] sm:$0xff] %vm98_vm0, %v1097_v24  ;;  %v1095_v4 = vadd.f32 %v1079_v44, %v1063_v15  ;;  %v1066_v11 = vadd.f32 %v1974_v37, %v1043_v41  ;;  %1028 = vst.msk [vmem:[#allocation4 + $0x78] sm:$0xff] %vm98_vm0, %v1012_v12  ;;  %v1010_v45 = vadd.f32 %v985_v26, %v825_v38 }
 0x316   :  { %v1041_v48 = vld [vmem:[#allocation4 + $0x48] sm:$0xff] }
 0x317   :  { %1111 = vst.msk [vmem:[%s2077_s8 + $0x40] sm:$0xff] %vm98_vm0, %v1095_v4  ;;  %v1098_v29 = vadd.f32 %v1082_v42, %v1066_v11  ;;  %v1064_v51 = vadd.f32 %v1974_v37, %v1041_v48  ;;  %1026 = vst.msk [vmem:[#allocation4 + $0x68] sm:$0xff] %vm98_vm0, %v1010_v45 }
 0x318   :  { %v1046_v39 = vld [vmem:[#allocation4 + $0x70] sm:$0xff] }
 0x319   :  { %1114 = vst.msk [vmem:[%s2077_s8 + $0x58] sm:$0xff] %vm98_vm0, %v1098_v29  ;;  %v1096_v49 = vadd.f32 %v1080_v27, %v1064_v51  ;;  %v1069_v30 = vadd.f32 %v1974_v37, %v1046_v39 }
 0x31a   :  { %v1044_v61 = vld [vmem:[#allocation4 + $0x60] sm:$0xff] }
 0x31b   :  { %1112 = vst.msk [vmem:[%s2077_s8 + $0x48] sm:$0xff] %vm98_vm0, %v1096_v49  ;;  %v1101_v31 = vadd.f32 %v1085_v54, %v1069_v30  ;;  %v1067_v14 = vadd.f32 %v1974_v37, %v1044_v61 }
 0x31c   :  { %v1047_v59 = vld [vmem:[#allocation4 + $0x78] sm:$0xff] }
 0x31d   :  { %1117 = vst.msk [vmem:[%s2077_s8 + $0x70] sm:$0xff] %vm98_vm0, %v1101_v31  ;;  %v1099_v63 = vadd.f32 %v1083_v13, %v1067_v14  ;;  %v1070_v28 = vadd.f32 %v1974_v37, %v1047_v59 }
 0x31e   :  { %v1045_v0 = vld [vmem:[#allocation4 + $0x68] sm:$0xff] }
 0x31f   :  { %1115 = vst.msk [vmem:[%s2077_s8 + $0x60] sm:$0xff] %vm98_vm0, %v1099_v63  ;;  %v1102_v10 = vadd.f32 %v1086_v62, %v1070_v28  ;;  %v1068_v1 = vadd.f32 %v1974_v37, %v1045_v0 }
 0x321   :  { %1118 = vst.msk [vmem:[%s2077_s8 + $0x78] sm:$0xff] %vm98_vm0, %v1102_v10  ;;  %v1100_v52 = vadd.f32 %v1084_v6, %v1068_v1 }
 0x323   :  { %1116 = vst.msk [vmem:[%s2077_s8 + $0x68] sm:$0xff] %vm98_vm0, %v1100_v52 }

// kernel: basic_layer_forward.10
= control target key start
LH: loop header
LB: loop body
LE: loop exit
PB: predicated region body
PF: predicated region fallthrough
CT: control target
= control target key end

     0   :  { %v474_v1 = vmov 0   ;;  %vm46_vm0 = vcmask 130048   ;;  %vm105_vm1 = vcmask 1043456   ;;  %vm106_vm2 = vcmask 130052   ;;  %s603_s0 = inlined_call_operand.vmem [shape: bf16[4,16,144], index: 0, kind: input, shape index: {}]   ;;  %s604_s1 = inlined_call_operand.vmem [shape: bf16[4,16,16], index: 1, kind: input, shape index: {}]   ;;  %s605_s2 = inlined_call_operand.vmem [shape: f32[4,16,1], index: 2, kind: input, shape index: {}]   ;;  %s606_s3 = inlined_call_operand.vmem [shape: bf16[4,16,144], index: 3, kind: output, shape index: {}]  }
   0x1   :  { %v458_v0 = vld [vmem:[%s603_s0 + $0x4] ss:$8 sps:$4 sm:$0xff]   ;;  %82 = vmatprep.mubr.bf16.mxu0 %v474_v1  ;;  %179 = vmatprep.mubr.bf16.mxu1 %v474_v1  ;;  %v460_v2 = vld [vmem:[%s603_s0 + $0x14] ss:$8 sps:$4 sm:$0xff]   ;;  %v462_v3 = vld [vmem:[%s603_s0] ss:$8 sps:$4 sm:$0xff]  }
   0x2   :  { %457 = vset.pattern.permute.xlu1 %v474_v1  ;;  %456 = vset.pattern.permute.xlu0 %v474_v1  ;;  %v463_v4 = vld [vmem:[%s603_s0 + $0x10] ss:$8 sps:$4 sm:$0xff]   ;;  %v464_v5 = vld [vmem:[%s604_s1] sm:$0xff]   ;;  %v465_v6 = vld [vmem:[%s604_s1 + $0x8] sm:$0xff]  }
   0x3   :  { %64 = vmatprep.subr.bf16.mxu0 %v458_v0  ;;  %161 = vmatprep.subr.bf16.mxu1 %v460_v2  ;;  %v466_v7 = vld [vmem:[%s603_s0 + $0x20] ss:$8 sps:$4 sm:$0xff]   ;;  %v468_v8 = vld [vmem:[%s603_s0 + $0x24] ss:$8 sps:$4 sm:$0xff]   ;;  %v469_v9 = vld [vmem:[%s603_s0 + $0x30] ss:$8 sps:$4 sm:$0xff]  }
   0x4   :  { %65 = vmatpush1.bf16.msra.mxu0 %v462_v3  ;;  %162 = vmatpush1.bf16.msra.mxu1 %v463_v4  ;;  %v471_v10 = vld [vmem:[%s603_s0 + $0x34] ss:$8 sps:$4 sm:$0xff]   ;;  %v19_v12 = vld [vmem:[%s605_s2] sm:$0xff]  ;;  %v20_v16 = vld [vmem:[%s605_s2 + $0x8] sm:$0xff] }
   0x5   :  { %256 = vmatprep.subr.bf16.mxu0 %v468_v8  ;;  %351 = vmatprep.subr.bf16.mxu1 %v471_v10  ;;  %v409_v11 = vld [vmem:[%s605_s2 + $0x10] sm:$0xff]  ;;  %v473_v14 = vld [vmem:[%s604_s1 + $0x18] sm:$0xff]   ;;  %v424_v17 = vld [vmem:[%s605_s2 + $0x28] sm:$0xff] }
   0x6   :  { %v472_v13 = vld [vmem:[%s604_s1 + $0x10] sm:$0xff]   ;;  %121 = vperm.xlu1 %457, %v409_v11   ;;  %23 = vperm.xlu0 %456, %v19_v12   ;;  %v410_v15 = vld [vmem:[%s605_s2 + $0x18] sm:$0xff]  ;;  %v423_v18 = vld [vmem:[%s605_s2 + $0x20] sm:$0xff] }
   0x7   :  { %402 = vmatmul.mubr.msk.bf16.vlgmr.msra.gmra.mxu0 %vm46_vm0, %v464_v5  ;;  %414 = vmatmul.mubr.msk.bf16.vlgmr.msra.gmra.mxu1 %vm46_vm0, %v465_v6  ;;  %v438_v19 = vld [vmem:[%s605_s2 + $0x38] sm:$0xff]  ;;  %v437_v20 = vld [vmem:[%s605_s2 + $0x30] sm:$0xff]  ;;  %vm559_vm3 = vmor %vm106_vm2, %vm105_vm1 }
   0x8   :  { %274 = vmatprep.mubr.bf16.mxu0 %v474_v1  ;;  %257 = vmatpush1.bf16.msra.mxu0 %v466_v7 }
   0x9   :  { %352 = vmatpush1.bf16.msra.mxu1 %v469_v9  ;;  %369 = vmatprep.mubr.bf16.mxu1 %v474_v1 }
   0xa   :  { %126 = vperm.xlu1 %457, %v410_v15   ;;  %28 = vperm.xlu0 %456, %v20_v16  }
   0xe   :  { %221 = vperm.xlu1 %457, %v424_v17   ;;  %216 = vperm.xlu0 %456, %v423_v18  }
   0xf   :  { %428 = vmatmul.mubr.msk.bf16.vlgmr.msra.gmra.mxu0 %vm46_vm0, %v472_v13  ;;  %442 = vmatmul.mubr.msk.bf16.vlgmr.msra.gmra.mxu1 %vm46_vm0, %v473_v14 }
  0x12   :  { %316 = vperm.xlu1 %457, %v438_v19   ;;  %311 = vperm.xlu0 %456, %v437_v20  }
  0x81   :  { %v24_v21 = vpop.permute.xlu0 %23  ;;  %v122_v22 = vpop.permute.xlu1 %121 }
  0x85   :  { %v29_v23 = vpop.permute.xlu0 %28  ;;  %v127_v26 = vpop.permute.xlu1 %126 }
  0x89   :  { %v217_v29 = vpop.permute.xlu0 %216  ;;  %v222_v41 = vpop.permute.xlu1 %221 }
  0x8d   :  { %v312_v48 = vpop.permute.xlu0 %311  ;;  %v317_v59 = vpop.permute.xlu1 %316 }
  0xc7   :  { %v84_v24 = vpop.f32.mrf.mxu0  ;;  %v181_v25 = vpop.f32.mrf.mxu1 }
  0xc8   :  { %v85_v30 = vadd.f32 %v84_v24, %v24_v21  ;;  %v182_v31 = vadd.f32 %v181_v25, %v122_v22 }
  0xc9   :  { %v86_v27 = vpop.f32.mrf.mxu0  ;;  %v183_v28 = vpop.f32.mrf.mxu1 }
  0xca   :  { %v87_v32 = vadd.f32 %v86_v27, %v24_v21  ;;  %v184_v33 = vadd.f32 %v183_v28, %v122_v22 }
  0xcb   :  { %v88_v35 = vpop.f32.mrf.mxu0  ;;  %v185_v36 = vpop.f32.mrf.mxu1 }
  0xcc   :  { %v447_v37 = vpack.c.bf16 %v87_v32, %v85_v30  ;;  %v449_v38 = vpack.c.bf16 %v184_v33, %v182_v31  ;;  %v89_v42 = vadd.f32 %v88_v35, %v29_v23  ;;  %v186_v43 = vadd.f32 %v185_v36, %v127_v26 }
  0xcd   :  { %v90_v39 = vpop.f32.mrf.mxu0  ;;  %v187_v40 = vpop.f32.mrf.mxu1 }
  0xce   :  { %108 = vst.msk [vmem:[%s606_s3] sm:$0xff] %vm559_vm3, %v447_v37  ;;  %417 = vst.msk [vmem:[%s606_s3 + $0x10] sm:$0xff] %vm559_vm3, %v449_v38  ;;  %v91_v44 = vadd.f32 %v90_v39, %v29_v23  ;;  %v188_v45 = vadd.f32 %v187_v40, %v127_v26 }
  0xcf   :  { %v276_v46 = vpop.f32.mrf.mxu0  ;;  %v371_v47 = vpop.f32.mrf.mxu1 }
  0xd0   :  { %v448_v49 = vpack.c.bf16 %v91_v44, %v89_v42  ;;  %v450_v50 = vpack.c.bf16 %v188_v45, %v186_v43  ;;  %v277_v53 = vadd.f32 %v276_v46, %v217_v29  ;;  %v372_v54 = vadd.f32 %v371_v47, %v312_v48 }
  0xd1   :  { %v278_v51 = vpop.f32.mrf.mxu0  ;;  %v373_v52 = vpop.f32.mrf.mxu1 }
  0xd2   :  { %109 = vst.msk [vmem:[%s606_s3 + $0x8] sm:$0xff] %vm559_vm3, %v448_v49  ;;  %418 = vst.msk [vmem:[%s606_s3 + $0x18] sm:$0xff] %vm559_vm3, %v450_v50  ;;  %v279_v55 = vadd.f32 %v278_v51, %v217_v29  ;;  %v374_v56 = vadd.f32 %v373_v52, %v312_v48 }
  0xd3   :  { %v280_v57 = vpop.f32.mrf.mxu0  ;;  %v375_v58 = vpop.f32.mrf.mxu1 }
  0xd4   :  { %v451_v60 = vpack.c.bf16 %v279_v55, %v277_v53  ;;  %v453_v61 = vpack.c.bf16 %v374_v56, %v372_v54  ;;  %v281_v0 = vadd.f32 %v280_v57, %v222_v41  ;;  %v376_v1 = vadd.f32 %v375_v58, %v317_v59 }
  0xd5   :  { %v282_v62 = vpop.f32.mrf.mxu0  ;;  %v377_v63 = vpop.f32.mrf.mxu1 }
  0xd6   :  { %431 = vst.msk [vmem:[%s606_s3 + $0x20] sm:$0xff] %vm559_vm3, %v451_v60  ;;  %445 = vst.msk [vmem:[%s606_s3 + $0x30] sm:$0xff] %vm559_vm3, %v453_v61  ;;  %v283_v2 = vadd.f32 %v282_v62, %v222_v41  ;;  %v378_v3 = vadd.f32 %v377_v63, %v317_v59 }
  0xd8   :  { %v452_v4 = vpack.c.bf16 %v283_v2, %v281_v0  ;;  %v454_v5 = vpack.c.bf16 %v378_v3, %v376_v1 }
  0xda   :  { %432 = vst.msk [vmem:[%s606_s3 + $0x28] sm:$0xff] %vm559_vm3, %v452_v4  ;;  %446 = vst.msk [vmem:[%s606_s3 + $0x38] sm:$0xff] %vm559_vm3, %v454_v5 }

</bundles_post_ra>
